<compile_context>
chip_gen: v7x
topology: tpu7x:2x2x1
jax: 0.10.0
libtpu: 0.0.40
codegen_flags: <defaults>
</compile_context>

<pallas_src>
import jax
import jax.numpy as jnp
from jax.experimental import pallas as pl
from jax.experimental.pallas import tpu as pltpu


IN_DIM = 784       # 28 * 28
HID_DIM = 400
HID_PAD = 512      # hidden padded to a lane-dense multiple of 128
LAT_DIM = 20
OUT_PAD = 128      # fused (mu | log_var | zeros) output padded to 128 lanes


def _round_up(x, m):
    return (x + m - 1) // m * m


def _choose_tile_b(b):
    # Fill the MXU M dimension; for large batches prefer 256 rows (v6e/v7x MXU
    # width) while keeping >= 2 grid steps so both v7x TensorCores get work.
    if b >= 512:
        return 256
    return 128


def encoder_kernel(x_ref, w1_ref, b1_ref, w23_ref, b23_ref, out_ref):
    # fc1 + ReLU (bf16 operands, f32 MXU accumulation, f32 epilogue)
    h = jnp.dot(x_ref[...], w1_ref[...], preferred_element_type=jnp.float32)
    h = jnp.maximum(h + b1_ref[...], 0.0)
    # fused fc2/fc3: one (TILE_B, 512) @ (512, 128) matmul, lane-dense output
    out = jnp.dot(h.astype(jnp.bfloat16), w23_ref[...],
                  preferred_element_type=jnp.float32) + b23_ref[...]
    out_ref[...] = out.astype(out_ref.dtype)


def encoder_forward(x_nchw, params):
    """x_nchw: (B, 1, 28, 28) float32 -> (mu, log_var), each (B, 20) float32."""
    w1, b1, w2, b2, w3, b3 = params
    B = x_nchw.shape[0]

    # Glue: same as torch x.view(-1, 784); cast activations to bf16.
    x = x_nchw.reshape(B, IN_DIM).astype(jnp.bfloat16)

    tile_b = _choose_tile_b(B)
    B_pad = _round_up(B, tile_b)
    if B_pad != B:
        x = jnp.pad(x, ((0, B_pad - B), (0, 0)))

    # Weight prep (pure glue): transpose to (in, out), pad hidden 400->512,
    # fuse fc2+fc3 and pad the fused output 40->128, cast weights to bf16.
    w1t = jnp.zeros((IN_DIM, HID_PAD), jnp.bfloat16)
    w1t = w1t.at[:, :HID_DIM].set(w1.T.astype(jnp.bfloat16))
    b1p = jnp.zeros((1, HID_PAD), jnp.float32)
    b1p = b1p.at[:, :HID_DIM].set(b1.reshape(1, HID_DIM))

    w23 = jnp.zeros((HID_PAD, OUT_PAD), jnp.bfloat16)
    w23 = w23.at[:HID_DIM, :LAT_DIM].set(w2.T.astype(jnp.bfloat16))
    w23 = w23.at[:HID_DIM, LAT_DIM:2 * LAT_DIM].set(w3.T.astype(jnp.bfloat16))
    b23 = jnp.zeros((1, OUT_PAD), jnp.float32)
    b23 = b23.at[:, :LAT_DIM].set(b2.reshape(1, LAT_DIM))
    b23 = b23.at[:, LAT_DIM:2 * LAT_DIM].set(b3.reshape(1, LAT_DIM))

    grid = (B_pad // tile_b,)
    out = pl.pallas_call(
        encoder_kernel,
        out_shape=jax.ShapeDtypeStruct((B_pad, OUT_PAD), jnp.float32),
        grid_spec=pltpu.PrefetchScalarGridSpec(
            num_scalar_prefetch=0,
            grid=grid,
            in_specs=[
                pl.BlockSpec((tile_b, IN_DIM), lambda i: (i, 0)),    # x tile
                pl.BlockSpec((IN_DIM, HID_PAD), lambda i: (0, 0)),   # W1^T (padded)
                pl.BlockSpec((1, HID_PAD), lambda i: (0, 0)),        # b1 (padded)
                pl.BlockSpec((HID_PAD, OUT_PAD), lambda i: (0, 0)),  # W2^T|W3^T fused
                pl.BlockSpec((1, OUT_PAD), lambda i: (0, 0)),        # b2|b3 fused
            ],
            out_specs=pl.BlockSpec((tile_b, OUT_PAD), lambda i: (i, 0)),
        ),
        compiler_params=pltpu.CompilerParams(
            dimension_semantics=("parallel",)),
    )(x, w1t, b1p, w23, b23)

    mu = out[:B, :LAT_DIM]
    log_var = out[:B, LAT_DIM:2 * LAT_DIM]
    return mu, log_var


def init_params(key):
    """Deterministic synthetic parameters with PyTorch nn.Linear shapes."""
    k1, k2, k3, k4, k5, k6 = jax.random.split(key, 6)
    s1 = 1.0 / jnp.sqrt(IN_DIM)
    s2 = 1.0 / jnp.sqrt(HID_DIM)
    w1 = jax.random.uniform(k1, (HID_DIM, IN_DIM), jnp.float32, -s1, s1)
    b1 = jax.random.uniform(k2, (HID_DIM,), jnp.float32, -s1, s1)
    w2 = jax.random.uniform(k3, (LAT_DIM, HID_DIM), jnp.float32, -s2, s2)
    b2 = jax.random.uniform(k4, (LAT_DIM,), jnp.float32, -s2, s2)
    w3 = jax.random.uniform(k5, (LAT_DIM, HID_DIM), jnp.float32, -s2, s2)
    b3 = jax.random.uniform(k6, (LAT_DIM,), jnp.float32, -s2, s2)
    return (w1, b1, w2, b2, w3, b3)


def reference_forward_f32(x_nchw, params):
    """Pure-JAX f32 reference matching the PyTorch forward exactly."""
    w1, b1, w2, b2, w3, b3 = params
    x = x_nchw.reshape(-1, IN_DIM)
    h = jnp.maximum(x @ w1.T + b1, 0.0)
    return h @ w2.T + b2, h @ w3.T + b3


def reference_forward_bf16(x_nchw, params):
    """Reference applying the same bf16 casts / f32 accumulation as the kernel."""
    w1, b1, w2, b2, w3, b3 = params
    x = x_nchw.reshape(-1, IN_DIM).astype(jnp.bfloat16)
    h = jnp.dot(x, w1.T.astype(jnp.bfloat16),
                preferred_element_type=jnp.float32) + b1
    h = jnp.maximum(h, 0.0).astype(jnp.bfloat16)
    mu = jnp.dot(h, w2.T.astype(jnp.bfloat16),
                 preferred_element_type=jnp.float32) + b2
    lv = jnp.dot(h, w3.T.astype(jnp.bfloat16),
                 preferred_element_type=jnp.float32) + b3
    return mu, lv


def _check(B, key):
    kx, kp = jax.random.split(key)
    x = jax.random.normal(kx, (B, 1, 28, 28), jnp.float32)  # NCHW, like MNIST
    params = init_params(kp)

    mu, log_var = encoder_forward(x, params)
    jax.block_until_ready((mu, log_var))
    assert mu.shape == (B, LAT_DIM) and log_var.shape == (B, LAT_DIM)

    # Bit-faithful structural check against a bf16-cast baseline.
    mu_b, lv_b = reference_forward_bf16(x, params)
    assert jnp.allclose(mu, mu_b, atol=1e-3, rtol=1e-3)
    assert jnp.allclose(log_var, lv_b, atol=1e-3, rtol=1e-3)

    # Loose sanity check against the exact f32 / PyTorch semantics.
    mu_f, lv_f = reference_forward_f32(x, params)
    assert jnp.allclose(mu, mu_f, atol=1e-1, rtol=1e-1)
    assert jnp.allclose(log_var, lv_f, atol=1e-1, rtol=1e-1)


if __name__ == "__main__":
    key = jax.random.PRNGKey(0)
    _check(8, key)      # small batch -> padded to one 128-row tile
    _check(200, key)    # non-multiple batch -> padded to 256, 2 grid steps
    print("KERNEL_OK")
</pallas_src>

<mosaic_0001>
module attributes {stable_mosaic.version = 11 : i64} {
  func.func @encoder_kernel(%arg0: i32, %arg1: memref<128x784xbf16, #tpu.memory_space<vmem>>, %arg2: memref<784x512xbf16, #tpu.memory_space<vmem>>, %arg3: memref<1x512xf32, #tpu.memory_space<vmem>>, %arg4: memref<512x128xbf16, #tpu.memory_space<vmem>>, %arg5: memref<1x128xf32, #tpu.memory_space<vmem>>, %arg6: memref<128x128xf32, #tpu.memory_space<vmem>>) attributes {dimension_semantics = [#tpu.dimension_semantics<parallel>], iteration_bounds = array<i64: 1>, scalar_prefetch = 0 : i64, scratch_operands = 0 : i64, tpu.core_type = #tpu.core_type<tc>, window_params = [{transform_indices = @transform_0, window_bounds = array<i64: 128, 784>}, {pipeline_mode = #tpu.pipeline_mode<synchronous>, transform_indices = @transform_1, window_bounds = array<i64: 784, 512>}, {pipeline_mode = #tpu.pipeline_mode<synchronous>, transform_indices = @transform_2, window_bounds = array<i64: 1, 512>}, {pipeline_mode = #tpu.pipeline_mode<synchronous>, transform_indices = @transform_3, window_bounds = array<i64: 512, 128>}, {pipeline_mode = #tpu.pipeline_mode<synchronous>, transform_indices = @transform_4, window_bounds = array<i64: 1, 128>}, {transform_indices = @transform_5, window_bounds = array<i64: 128, 128>}]} {
    %c0 = arith.constant 0 : index
    %c0_0 = arith.constant 0 : index
    %0 = vector.load %arg1[%c0, %c0_0] : memref<128x784xbf16, #tpu.memory_space<vmem>>, vector<128x784xbf16>
    %c0_1 = arith.constant 0 : index
    %c0_2 = arith.constant 0 : index
    %1 = vector.load %arg2[%c0_1, %c0_2] : memref<784x512xbf16, #tpu.memory_space<vmem>>, vector<784x512xbf16>
    %cst = arith.constant dense<0.000000e+00> : vector<128x512xf32>
    %2 = tpu.matmul %0, %1, %cst {dimension_numbers = #tpu.dot_dimension_numbers<[1], [0], [0], [1], [0, 0, 1, 1], [], []>} : vector<128x784xbf16>, vector<784x512xbf16>, vector<128x512xf32> -> vector<128x512xf32>
    %c0_3 = arith.constant 0 : index
    %c0_4 = arith.constant 0 : index
    %3 = vector.load %arg3[%c0_3, %c0_4] : memref<1x512xf32, #tpu.memory_space<vmem>>, vector<1x512xf32>
    %4 = vector.broadcast %3 : vector<1x512xf32> to vector<128x512xf32>
    %5 = arith.addf %2, %4 : vector<128x512xf32>
    %cst_5 = arith.constant 0.000000e+00 : f32
    %6 = vector.broadcast %cst_5 : f32 to vector<128x512xf32>
    %7 = arith.maximumf %5, %6 : vector<128x512xf32>
    %8 = arith.truncf %7 : vector<128x512xf32> to vector<128x512xbf16>
    %c0_6 = arith.constant 0 : index
    %c0_7 = arith.constant 0 : index
    %9 = vector.load %arg4[%c0_6, %c0_7] : memref<512x128xbf16, #tpu.memory_space<vmem>>, vector<512x128xbf16>
    %cst_8 = arith.constant dense<0.000000e+00> : vector<128x128xf32>
    %10 = tpu.matmul %8, %9, %cst_8 {dimension_numbers = #tpu.dot_dimension_numbers<[1], [0], [0], [1], [0, 0, 1, 1], [], []>} : vector<128x512xbf16>, vector<512x128xbf16>, vector<128x128xf32> -> vector<128x128xf32>
    %c0_9 = arith.constant 0 : index
    %c0_10 = arith.constant 0 : index
    %11 = vector.load %arg5[%c0_9, %c0_10] : memref<1x128xf32, #tpu.memory_space<vmem>>, vector<1x128xf32>
    %12 = vector.broadcast %11 : vector<1x128xf32> to vector<128x128xf32>
    %13 = arith.addf %10, %12 : vector<128x128xf32>
    %c0_11 = arith.constant 0 : index
    %c0_12 = arith.constant 0 : index
    %14 = vector.load %arg6[%c0_11, %c0_12] : memref<128x128xf32, #tpu.memory_space<vmem>>, vector<128x128xf32>
    tpu.vector_store %arg6[%c0_11, %c0_12], %13 {strides = array<i32>} : memref<128x128xf32, #tpu.memory_space<vmem>>, vector<128x128xf32>,
    return
  }
  func.func @transform_0(%arg0: i32) -> (i32, i32) {
    %c0_i32 = arith.constant 0 : i32
    %c0_i32_0 = arith.constant 0 : i32
    return %arg0, %c0_i32 : i32, i32
  }
  func.func @transform_1(%arg0: i32) -> (i32, i32) {
    %c0_i32 = arith.constant 0 : i32
    %c0_i32_0 = arith.constant 0 : i32
    %c0_i32_1 = arith.constant 0 : i32
    return %c0_i32, %c0_i32_0 : i32, i32
  }
  func.func @transform_2(%arg0: i32) -> (i32, i32) {
    %c0_i32 = arith.constant 0 : i32
    %c0_i32_0 = arith.constant 0 : i32
    %c0_i32_1 = arith.constant 0 : i32
    return %c0_i32, %c0_i32_0 : i32, i32
  }
  func.func @transform_3(%arg0: i32) -> (i32, i32) {
    %c0_i32 = arith.constant 0 : i32
    %c0_i32_0 = arith.constant 0 : i32
    %c0_i32_1 = arith.constant 0 : i32
    return %c0_i32, %c0_i32_0 : i32, i32
  }
  func.func @transform_4(%arg0: i32) -> (i32, i32) {
    %c0_i32 = arith.constant 0 : i32
    %c0_i32_0 = arith.constant 0 : i32
    %c0_i32_1 = arith.constant 0 : i32
    return %c0_i32, %c0_i32_0 : i32, i32
  }
  func.func @transform_5(%arg0: i32) -> (i32, i32) {
    %c0_i32 = arith.constant 0 : i32
    %c0_i32_0 = arith.constant 0 : i32
    return %arg0, %c0_i32 : i32, i32
  }
}

</mosaic_0001>

<bundles_post_ra>
// kernel: tpu_custom_call.1
= control target key start
LH: loop header
LB: loop body
LE: loop exit
PB: predicated region body
PF: predicated region fallthrough
CT: control target
= control target key end

     0   :  { %10 = vsyncpa [#allocation3], 0  ;;  %s4692_s0 = inlined_call_operand.vmem [shape: bf16[128,784], index: 0, kind: input, shape index: {}]   ;;  %s4693_s1 = inlined_call_operand.hbm [shape: bf16[784,512], index: 1, kind: input, shape index: {}]   ;;  %s4694_s2 = inlined_call_operand.vmem [shape: f32[1,512], index: 2, kind: input, shape index: {}]   ;;  %s4695_s3 = inlined_call_operand.vmem [shape: bf16[512,128], index: 3, kind: input, shape index: {}]   ;;  %s4696_s4 = inlined_call_operand.vmem [shape: f32[1,128], index: 4, kind: input, shape index: {}]   ;;  %s4697_s5 = inlined_call_operand.hbm [shape: f32[128,128], index: 5, kind: output, shape index: {}]  }
   0x1   :  { %11 = vsyncpa [#allocation4], 0  ;;  %s4239_s18 = smov [#allocation2]   ;;  %s4191_s22 = scalar_lea.hbm %s4693_s1, 25088 }
   0x2   :  { %s19_s19 = sshll.u32 %s4239_s18, 4  ;;  %p4192_p0 = scmp.ne.s32.totalorder %s4693_s1, %s4191_s22  ;;  %s20_s19 = int_to_ptr.vmem [resolvable:$true] %s19_s19 }
   0x3   :  { %p4195_p1 = scmp.lt.u32.totalorder %s4191_s22, %s4693_s1 }
   0x5   :  { %p4197_p2 = pnand %p4195_p1, %p4192_p0 }
   0x7   :  { %4200 = shalt.err (!%p4197_p2)
}
   0x8   :  { %s4201_s27 = scalar_lea.vmem %s20_s19, 25088  ;;  %p4206_p4 = scmp.lt.s32.totalorder %s20_s19, %s20_s19 }
   0x9   :  { %p4202_p3 = scmp.ne.s32.totalorder %s20_s19, %s4201_s27  ;;  %p4207_p5 = scmp.lt.s32.totalorder %s4201_s27, %s4201_s27 }
   0xb   :  { %p4208_p6 = por %p4207_p5, %p4206_p4 }
   0xd   :  { %p4209_p7 = pnand %p4208_p6, %p4202_p3 }
   0xf   :  { %4212 = shalt.err (!%p4209_p7)
}
  0x10   :  { %s4240_s28 = smov 256   ;;  %s4241_s29 = smov 16  }
  0x11   :  { %25 = dma.hbm_to_vmem [thread:$0]  %s4693_s1, 25088, %s20_s19, [#allocation3], %s4240_s28, %s4240_s28, %s4241_s29  }
  0x12   :  { %4235 = dma.done.wait [#allocation3], 25088  }
  0x13   :  { %4236 = vsyncadd [#allocation3], 4294942208  ;;  %v3785_v0 = vld [vmem:[#allocation2 + $0x4] ss:$16 sps:$4 sm:$0xff]   ;;  %v3787_v1 = vld [vmem:[#allocation2 + $0xc] ss:$16 sps:$4 sm:$0xff]  }
  0x14   :  { %1603 = vmatprep.subr.bf16.mxu0 %v3785_v0  ;;  %v3789_v2 = vld [vmem:[#allocation2] ss:$16 sps:$4 sm:$0xff]   ;;  %v3790_v3 = vld [vmem:[#allocation2 + $0x8] ss:$16 sps:$4 sm:$0xff]   ;;  %2055 = vmatprep.subr.bf16.mxu1 %v3787_v1  ;;  %v3791_v4 = vld [vmem:[#allocation2 + $0x24] ss:$16 sps:$4 sm:$0xff]  }
  0x15   :  { %1604 = vmatpush1.bf16.msra.mxu0 %v3789_v2  ;;  %2056 = vmatpush1.bf16.msra.mxu1 %v3790_v3  ;;  %v3793_v5 = vld [vmem:[#allocation2 + $0x2c] ss:$16 sps:$4 sm:$0xff]   ;;  %v3795_v6 = vld [vmem:[#allocation2 + $0x20] ss:$16 sps:$4 sm:$0xff]   ;;  %v3796_v7 = vld [vmem:[#allocation2 + $0x28] ss:$16 sps:$4 sm:$0xff]  }
  0x16   :  { %1605 = vmatprep.subr.bf16.mxu0 %v3791_v4  ;;  %2057 = vmatprep.subr.bf16.mxu1 %v3793_v5  ;;  %v3797_v8 = vld [vmem:[#allocation2 + $0x44] ss:$16 sps:$4 sm:$0xff]   ;;  %v3799_v9 = vld [vmem:[#allocation2 + $0x4c] ss:$16 sps:$4 sm:$0xff]   ;;  %v3801_v10 = vld [vmem:[#allocation2 + $0x40] ss:$16 sps:$4 sm:$0xff]  }
  0x17   :  { %v3802_v11 = vld [vmem:[#allocation2 + $0x48] ss:$16 sps:$4 sm:$0xff]   ;;  %v3803_v12 = vld [vmem:[#allocation2 + $0x64] ss:$16 sps:$4 sm:$0xff]   ;;  %v3805_v13 = vld [vmem:[#allocation2 + $0x6c] ss:$16 sps:$4 sm:$0xff]  }
  0x18   :  { %v3807_v14 = vld [vmem:[#allocation2 + $0x60] ss:$16 sps:$4 sm:$0xff]   ;;  %v3808_v15 = vld [vmem:[#allocation2 + $0x68] ss:$16 sps:$4 sm:$0xff]   ;;  %v3809_v16 = vld [vmem:[#allocation2 + $0x84] ss:$16 sps:$4 sm:$0xff]  }
  0x19   :  { %1606 = vmatpush1.bf16.msra.mxu0 %v3795_v6  ;;  %2058 = vmatpush1.bf16.msra.mxu1 %v3796_v7  ;;  %v3811_v17 = vld [vmem:[#allocation2 + $0x8c] ss:$16 sps:$4 sm:$0xff]   ;;  %v3813_v18 = vld [vmem:[#allocation2 + $0x80] ss:$16 sps:$4 sm:$0xff]   ;;  %v3814_v19 = vld [vmem:[#allocation2 + $0x88] ss:$16 sps:$4 sm:$0xff]  }
  0x1a   :  { %1607 = vmatprep.subr.bf16.mxu0 %v3797_v8  ;;  %2059 = vmatprep.subr.bf16.mxu1 %v3799_v9  ;;  %v3815_v20 = vld [vmem:[#allocation2 + $0xa4] ss:$16 sps:$4 sm:$0xff]   ;;  %v3817_v21 = vld [vmem:[#allocation2 + $0xac] ss:$16 sps:$4 sm:$0xff]   ;;  %v3819_v22 = vld [vmem:[#allocation2 + $0xa0] ss:$16 sps:$4 sm:$0xff]  }
  0x1b   :  { %v3820_v23 = vld [vmem:[#allocation2 + $0xa8] ss:$16 sps:$4 sm:$0xff]   ;;  %v3821_v24 = vld [vmem:[#allocation2 + $0xc4] ss:$16 sps:$4 sm:$0xff]   ;;  %v3823_v25 = vld [vmem:[#allocation2 + $0xcc] ss:$16 sps:$4 sm:$0xff]  }
  0x1c   :  { %v3825_v26 = vld [vmem:[#allocation2 + $0xc0] ss:$16 sps:$4 sm:$0xff]   ;;  %v3826_v27 = vld [vmem:[#allocation2 + $0xc8] ss:$16 sps:$4 sm:$0xff]   ;;  %v3827_v28 = vld [vmem:[#allocation2 + $0xe4] ss:$16 sps:$4 sm:$0xff]  }
  0x1d   :  { %1608 = vmatpush1.bf16.msra.mxu0 %v3801_v10  ;;  %2060 = vmatpush1.bf16.msra.mxu1 %v3802_v11  ;;  %v3829_v29 = vld [vmem:[#allocation2 + $0xec] ss:$16 sps:$4 sm:$0xff]   ;;  %v3831_v30 = vld [vmem:[#allocation2 + $0xe0] ss:$16 sps:$4 sm:$0xff]   ;;  %v3832_v31 = vld [vmem:[#allocation2 + $0xe8] ss:$16 sps:$4 sm:$0xff]  }
  0x1e   :  { %1609 = vmatprep.subr.bf16.mxu0 %v3803_v12  ;;  %2061 = vmatprep.subr.bf16.mxu1 %v3805_v13  ;;  %v3833_v32 = vld [vmem:[#allocation2 + $0x104] ss:$16 sps:$4 sm:$0xff]   ;;  %v3835_v33 = vld [vmem:[#allocation2 + $0x10c] ss:$16 sps:$4 sm:$0xff]   ;;  %v3837_v34 = vld [vmem:[#allocation2 + $0x100] ss:$16 sps:$4 sm:$0xff]  }
  0x1f   :  { %v3838_v35 = vld [vmem:[#allocation2 + $0x108] ss:$16 sps:$4 sm:$0xff]   ;;  %v3839_v36 = vld [vmem:[#allocation2 + $0x124] ss:$16 sps:$4 sm:$0xff]   ;;  %v3841_v37 = vld [vmem:[#allocation2 + $0x12c] ss:$16 sps:$4 sm:$0xff]  }
  0x20   :  { %v3843_v38 = vld [vmem:[#allocation2 + $0x120] ss:$16 sps:$4 sm:$0xff]   ;;  %v3844_v39 = vld [vmem:[#allocation2 + $0x128] ss:$16 sps:$4 sm:$0xff]   ;;  %v3845_v40 = vld [vmem:[#allocation2 + $0x144] ss:$16 sps:$4 sm:$0xff]  }
  0x21   :  { %1610 = vmatpush1.bf16.msra.mxu0 %v3807_v14  ;;  %2062 = vmatpush1.bf16.msra.mxu1 %v3808_v15  ;;  %v3847_v41 = vld [vmem:[#allocation2 + $0x14c] ss:$16 sps:$4 sm:$0xff]   ;;  %v3849_v42 = vld [vmem:[#allocation2 + $0x140] ss:$16 sps:$4 sm:$0xff]   ;;  %v3850_v43 = vld [vmem:[#allocation2 + $0x148] ss:$16 sps:$4 sm:$0xff]  }
  0x22   :  { %1611 = vmatprep.subr.bf16.mxu0 %v3809_v16  ;;  %2063 = vmatprep.subr.bf16.mxu1 %v3811_v17  ;;  %v3851_v44 = vld [vmem:[#allocation2 + $0x164] ss:$16 sps:$4 sm:$0xff]   ;;  %v3853_v45 = vld [vmem:[#allocation2 + $0x16c] ss:$16 sps:$4 sm:$0xff]   ;;  %v3855_v46 = vld [vmem:[#allocation2 + $0x160] ss:$16 sps:$4 sm:$0xff]  }
  0x23   :  { %v3856_v47 = vld [vmem:[#allocation2 + $0x168] ss:$16 sps:$4 sm:$0xff]   ;;  %v3883_v48 = vld [vmem:[%s4692_s0 + $0x4] ss:$28 sps:$4 sm:$0xff]   ;;  %v3859_v50 = vld [vmem:[#allocation2 + $0x18c] ss:$16 sps:$4 sm:$0xff]  }
  0x24   :  { %v3857_v49 = vld [vmem:[#allocation2 + $0x184] ss:$16 sps:$4 sm:$0xff]   ;;  %1635 = vmatprep.mubr.bf16.mxu0 %v3883_v48  ;;  %2087 = vmatprep.mubr.bf16.mxu1 %v3883_v48  ;;  %v3861_v51 = vld [vmem:[#allocation2 + $0x180] ss:$16 sps:$4 sm:$0xff]   ;;  %v3862_v52 = vld [vmem:[#allocation2 + $0x188] ss:$16 sps:$4 sm:$0xff]  }
  0x25   :  { %1612 = vmatpush1.bf16.msra.mxu0 %v3813_v18  ;;  %2064 = vmatpush1.bf16.msra.mxu1 %v3814_v19  ;;  %v3863_v53 = vld [vmem:[#allocation2 + $0x1a4] ss:$16 sps:$4 sm:$0xff]   ;;  %v3865_v54 = vld [vmem:[#allocation2 + $0x1ac] ss:$16 sps:$4 sm:$0xff]   ;;  %v3867_v55 = vld [vmem:[#allocation2 + $0x1a0] ss:$16 sps:$4 sm:$0xff]  }
  0x26   :  { %1613 = vmatprep.subr.bf16.mxu0 %v3815_v20  ;;  %2065 = vmatprep.subr.bf16.mxu1 %v3817_v21  ;;  %v3868_v56 = vld [vmem:[#allocation2 + $0x1a8] ss:$16 sps:$4 sm:$0xff]   ;;  %v3869_v57 = vld [vmem:[#allocation2 + $0x1c4] ss:$16 sps:$4 sm:$0xff]   ;;  %v3871_v58 = vld [vmem:[#allocation2 + $0x1cc] ss:$16 sps:$4 sm:$0xff]  }
  0x27   :  { %v3873_v59 = vld [vmem:[#allocation2 + $0x1c0] ss:$16 sps:$4 sm:$0xff]   ;;  %v3874_v60 = vld [vmem:[#allocation2 + $0x1c8] ss:$16 sps:$4 sm:$0xff]   ;;  %v3875_v61 = vld [vmem:[#allocation2 + $0x1e4] ss:$16 sps:$4 sm:$0xff]  }
  0x28   :  { %v3877_v62 = vld [vmem:[#allocation2 + $0x1ec] ss:$16 sps:$4 sm:$0xff]   ;;  %v3879_v63 = vld [vmem:[#allocation2 + $0x1e0] ss:$16 sps:$4 sm:$0xff]   ;;  %v3880_v0 = vld [vmem:[#allocation2 + $0x1e8] ss:$16 sps:$4 sm:$0xff]  }
  0x29   :  { %1614 = vmatpush1.bf16.msra.mxu0 %v3819_v22  ;;  %2066 = vmatpush1.bf16.msra.mxu1 %v3820_v23  ;;  %v3886_v1 = vld [vmem:[#allocation2 + $0x204] ss:$16 sps:$4 sm:$0xff]   ;;  %v3889_v2 = vld [vmem:[#allocation2 + $0x20c] ss:$16 sps:$4 sm:$0xff]   ;;  %v3884_v4 = vld [vmem:[#allocation2 + $0x200] ss:$16 sps:$4 sm:$0xff]  }
  0x2a   :  { %1615 = vmatprep.subr.bf16.mxu0 %v3821_v24  ;;  %2067 = vmatprep.subr.bf16.mxu1 %v3823_v25  ;;  %v3881_v3 = vld [vmem:[%s4692_s0] ss:$28 sps:$4 sm:$0xff]   ;;  %v3887_v5 = vld [vmem:[#allocation2 + $0x208] ss:$16 sps:$4 sm:$0xff]   ;;  %v3892_v6 = vld [vmem:[#allocation2 + $0x224] ss:$16 sps:$4 sm:$0xff]  }
  0x2b   :  { %v3895_v7 = vld [vmem:[#allocation2 + $0x22c] ss:$16 sps:$4 sm:$0xff]   ;;  %v3890_v9 = vld [vmem:[#allocation2 + $0x220] ss:$16 sps:$4 sm:$0xff]   ;;  %v3893_v10 = vld [vmem:[#allocation2 + $0x228] ss:$16 sps:$4 sm:$0xff]  }
  0x2c   :  { %v3896_v8 = vld [vmem:[%s4692_s0 + $0x3c] ss:$28 sps:$4 sm:$0xff]   ;;  %v3901_v11 = vld [vmem:[#allocation2 + $0x244] ss:$16 sps:$4 sm:$0xff]   ;;  %v3899_v14 = vld [vmem:[#allocation2 + $0x240] ss:$16 sps:$4 sm:$0xff]  }
  0x2d   :  { %1616 = vmatpush1.bf16.msra.mxu0 %v3825_v26  ;;  %2068 = vmatpush1.bf16.msra.mxu1 %v3826_v27  ;;  %v3904_v12 = vld [vmem:[#allocation2 + $0x24c] ss:$16 sps:$4 sm:$0xff]   ;;  %v3898_v13 = vld [vmem:[%s4692_s0 + $0x38] ss:$28 sps:$4 sm:$0xff]   ;;  %v3905_v19 = vld [vmem:[#allocation2 + $0x260] ss:$16 sps:$4 sm:$0xff]  }
  0x2e   :  { %1617 = vmatprep.subr.bf16.mxu0 %v3827_v28  ;;  %2069 = vmatprep.subr.bf16.mxu1 %v3829_v29  ;;  %v3902_v15 = vld [vmem:[#allocation2 + $0x248] ss:$16 sps:$4 sm:$0xff]   ;;  %v3907_v16 = vld [vmem:[#allocation2 + $0x264] ss:$16 sps:$4 sm:$0xff]   ;;  %v3910_v17 = vld [vmem:[#allocation2 + $0x26c] ss:$16 sps:$4 sm:$0xff]  }
  0x2f   :  { %v3911_v18 = vld [vmem:[%s4692_s0 + $0x74] ss:$28 sps:$4 sm:$0xff]   ;;  %v3908_v20 = vld [vmem:[#allocation2 + $0x268] ss:$16 sps:$4 sm:$0xff]   ;;  %v3919_v22 = vld [vmem:[#allocation2 + $0x28c] ss:$16 sps:$4 sm:$0xff]  }
  0x30   :  { %v3916_v21 = vld [vmem:[#allocation2 + $0x284] ss:$16 sps:$4 sm:$0xff]   ;;  %v3913_v23 = vld [vmem:[%s4692_s0 + $0x70] ss:$28 sps:$4 sm:$0xff]   ;;  %v3917_v25 = vld [vmem:[#allocation2 + $0x288] ss:$16 sps:$4 sm:$0xff]  }
  0x31   :  { %1618 = vmatpush1.bf16.msra.mxu0 %v3831_v30  ;;  %2070 = vmatpush1.bf16.msra.mxu1 %v3832_v31  ;;  %v3914_v24 = vld [vmem:[#allocation2 + $0x280] ss:$16 sps:$4 sm:$0xff]   ;;  %v3922_v26 = vld [vmem:[#allocation2 + $0x2a4] ss:$16 sps:$4 sm:$0xff]   ;;  %v3925_v27 = vld [vmem:[#allocation2 + $0x2ac] ss:$16 sps:$4 sm:$0xff]  }
  0x32   :  { %1619 = vmatprep.subr.bf16.mxu0 %v3833_v32  ;;  %2071 = vmatprep.subr.bf16.mxu1 %v3835_v33  ;;  %v3926_v28 = vld [vmem:[%s4692_s0 + $0xac] ss:$28 sps:$4 sm:$0xff]   ;;  %v3920_v29 = vld [vmem:[#allocation2 + $0x2a0] ss:$16 sps:$4 sm:$0xff]   ;;  %v3931_v31 = vld [vmem:[#allocation2 + $0x2c4] ss:$16 sps:$4 sm:$0xff]  }
  0x33   :  { %v3923_v30 = vld [vmem:[#allocation2 + $0x2a8] ss:$16 sps:$4 sm:$0xff]   ;;  %v3934_v32 = vld [vmem:[#allocation2 + $0x2cc] ss:$16 sps:$4 sm:$0xff]   ;;  %vm1578_vm0 = vcmask 130048  }
  0x34   :  { %v3928_v33 = vld [vmem:[%s4692_s0 + $0xa8] ss:$28 sps:$4 sm:$0xff]   ;;  %v3956_v48 = vld [vmem:[%s4692_s0 + $0x11c] ss:$28 sps:$4 sm:$0xff]  }
  0x35   :  { %1620 = vmatpush1.bf16.msra.mxu0 %v3837_v34  ;;  %2072 = vmatpush1.bf16.msra.mxu1 %v3838_v35  ;;  %v3929_v34 = vld [vmem:[#allocation2 + $0x2c0] ss:$16 sps:$4 sm:$0xff]   ;;  %v3932_v35 = vld [vmem:[#allocation2 + $0x2c8] ss:$16 sps:$4 sm:$0xff]  }
  0x36   :  { %1621 = vmatprep.subr.bf16.mxu0 %v3839_v36  ;;  %2073 = vmatprep.subr.bf16.mxu1 %v3841_v37  ;;  %v3937_v36 = vld [vmem:[#allocation2 + $0x2e4] ss:$16 sps:$4 sm:$0xff]   ;;  %v3940_v37 = vld [vmem:[#allocation2 + $0x2ec] ss:$16 sps:$4 sm:$0xff]  }
  0x39   :  { %1622 = vmatpush1.bf16.msra.mxu0 %v3843_v38  ;;  %2074 = vmatpush1.bf16.msra.mxu1 %v3844_v39  ;;  %v3941_v38 = vld [vmem:[%s4692_s0 + $0xe4] ss:$28 sps:$4 sm:$0xff]  }
  0x3a   :  { %1623 = vmatprep.subr.bf16.mxu0 %v3845_v40  ;;  %2075 = vmatprep.subr.bf16.mxu1 %v3847_v41  ;;  %v3935_v39 = vld [vmem:[#allocation2 + $0x2e0] ss:$16 sps:$4 sm:$0xff]   ;;  %v3938_v40 = vld [vmem:[#allocation2 + $0x2e8] ss:$16 sps:$4 sm:$0xff]   ;;  %v3946_v41 = vld [vmem:[#allocation2 + $0x304] ss:$16 sps:$4 sm:$0xff]  }
  0x3d   :  { %1624 = vmatpush1.bf16.msra.mxu0 %v3849_v42  ;;  %2076 = vmatpush1.bf16.msra.mxu1 %v3850_v43  ;;  %v3949_v42 = vld [vmem:[#allocation2 + $0x30c] ss:$16 sps:$4 sm:$0xff]  }
  0x3e   :  { %1625 = vmatprep.subr.bf16.mxu0 %v3851_v44  ;;  %2077 = vmatprep.subr.bf16.mxu1 %v3853_v45  ;;  %v3943_v43 = vld [vmem:[%s4692_s0 + $0xe0] ss:$28 sps:$4 sm:$0xff]   ;;  %v3947_v45 = vld [vmem:[#allocation2 + $0x308] ss:$16 sps:$4 sm:$0xff]  }
  0x3f   :  { %v3944_v44 = vld [vmem:[#allocation2 + $0x300] ss:$16 sps:$4 sm:$0xff]  }
  0x41   :  { %1626 = vmatpush1.bf16.msra.mxu0 %v3855_v46  ;;  %2078 = vmatpush1.bf16.msra.mxu1 %v3856_v47  ;;  %v3952_v46 = vld [vmem:[#allocation2 + $0x324] ss:$16 sps:$4 sm:$0xff]   ;;  %v3955_v47 = vld [vmem:[#allocation2 + $0x32c] ss:$16 sps:$4 sm:$0xff]  }
  0x42   :  { %1627 = vmatprep.subr.bf16.mxu0 %v3857_v49  ;;  %2079 = vmatprep.subr.bf16.mxu1 %v3859_v50  ;;  %v3950_v49 = vld [vmem:[#allocation2 + $0x320] ss:$16 sps:$4 sm:$0xff]   ;;  %v3953_v50 = vld [vmem:[#allocation2 + $0x328] ss:$16 sps:$4 sm:$0xff]  }
  0x45   :  { %1628 = vmatpush1.bf16.msra.mxu0 %v3861_v51  ;;  %2080 = vmatpush1.bf16.msra.mxu1 %v3862_v52  ;;  %v3961_v51 = vld [vmem:[#allocation2 + $0x344] ss:$16 sps:$4 sm:$0xff]   ;;  %v3964_v52 = vld [vmem:[#allocation2 + $0x34c] ss:$16 sps:$4 sm:$0xff]  }
  0x46   :  { %1629 = vmatprep.subr.bf16.mxu0 %v3863_v53  ;;  %2081 = vmatprep.subr.bf16.mxu1 %v3865_v54  ;;  %v3958_v53 = vld [vmem:[%s4692_s0 + $0x118] ss:$28 sps:$4 sm:$0xff]   ;;  %v3959_v54 = vld [vmem:[#allocation2 + $0x340] ss:$16 sps:$4 sm:$0xff]  }
  0x49   :  { %1630 = vmatpush1.bf16.msra.mxu0 %v3867_v55  ;;  %2082 = vmatpush1.bf16.msra.mxu1 %v3868_v56  ;;  %v3962_v55 = vld [vmem:[#allocation2 + $0x348] ss:$16 sps:$4 sm:$0xff]   ;;  %v3967_v56 = vld [vmem:[#allocation2 + $0x364] ss:$16 sps:$4 sm:$0xff]  }
  0x4a   :  { %1631 = vmatprep.subr.bf16.mxu0 %v3869_v57  ;;  %2083 = vmatprep.subr.bf16.mxu1 %v3871_v58  ;;  %v3970_v57 = vld [vmem:[#allocation2 + $0x36c] ss:$16 sps:$4 sm:$0xff]   ;;  %v3971_v58 = vld [vmem:[%s4692_s0 + $0x154] ss:$28 sps:$4 sm:$0xff]  }
  0x4d   :  { %1632 = vmatpush1.bf16.msra.mxu0 %v3873_v59  ;;  %2084 = vmatpush1.bf16.msra.mxu1 %v3874_v60  ;;  %v3965_v59 = vld [vmem:[#allocation2 + $0x360] ss:$16 sps:$4 sm:$0xff]   ;;  %v3968_v60 = vld [vmem:[#allocation2 + $0x368] ss:$16 sps:$4 sm:$0xff]  }
  0x4e   :  { %1633 = vmatprep.subr.bf16.mxu0 %v3875_v61  ;;  %2085 = vmatprep.subr.bf16.mxu1 %v3877_v62  ;;  %v3976_v61 = vld [vmem:[#allocation2 + $0x384] ss:$16 sps:$4 sm:$0xff]   ;;  %v3979_v62 = vld [vmem:[#allocation2 + $0x38c] ss:$16 sps:$4 sm:$0xff]  }
  0x51   :  { %1634 = vmatpush1.bf16.msra.mxu0 %v3879_v63  ;;  %2086 = vmatpush1.bf16.msra.mxu1 %v3880_v0  ;;  %v3973_v63 = vld [vmem:[%s4692_s0 + $0x150] ss:$28 sps:$4 sm:$0xff]  }
  0x52   :  { %1716 = vmatprep.subr.bf16.mxu0 %v3886_v1  ;;  %2168 = vmatprep.subr.bf16.mxu1 %v3889_v2  ;;  %v3974_v0 = vld [vmem:[#allocation2 + $0x380] ss:$16 sps:$4 sm:$0xff]   ;;  %v3977_v1 = vld [vmem:[#allocation2 + $0x388] ss:$16 sps:$4 sm:$0xff]   ;;  %v3982_v2 = vld [vmem:[#allocation2 + $0x3a4] ss:$16 sps:$4 sm:$0xff]  }
  0x54   :  { %1636 = vmatmul.mubr.bf16.vlgmr.msra.gmra.mrb[0].mxu0 %v3881_v3  ;;  %2088 = vmatmul.mubr.bf16.vlgmr.msra.gmra.mrb[0].mxu1 %v3881_v3  ;;  %v3985_v3 = vld [vmem:[#allocation2 + $0x3ac] ss:$16 sps:$4 sm:$0xff]  }
  0x55   :  { %1717 = vmatpush1.bf16.msra.mxu0 %v3884_v4  ;;  %2169 = vmatpush1.bf16.msra.mxu1 %v3887_v5  ;;  %v3986_v4 = vld [vmem:[%s4692_s0 + $0x18c] ss:$28 sps:$4 sm:$0xff]   ;;  %v3980_v5 = vld [vmem:[#allocation2 + $0x3a0] ss:$16 sps:$4 sm:$0xff]  }
  0x56   :  { %1718 = vmatprep.subr.bf16.mxu0 %v3892_v6  ;;  %2170 = vmatprep.subr.bf16.mxu1 %v3895_v7  ;;  %v3983_v6 = vld [vmem:[#allocation2 + $0x3a8] ss:$16 sps:$4 sm:$0xff]   ;;  %v3991_v7 = vld [vmem:[#allocation2 + $0x3c4] ss:$16 sps:$4 sm:$0xff]  }
  0x57   :  { %1645 = vmatprep.mubr.bf16.mxu0 %v3896_v8  ;;  %2097 = vmatprep.mubr.bf16.mxu1 %v3896_v8  ;;  %v3994_v8 = vld [vmem:[#allocation2 + $0x3cc] ss:$16 sps:$4 sm:$0xff]  }
  0x59   :  { %1719 = vmatpush1.bf16.msra.mxu0 %v3890_v9  ;;  %2171 = vmatpush1.bf16.msra.mxu1 %v3893_v10  ;;  %v3988_v9 = vld [vmem:[%s4692_s0 + $0x188] ss:$28 sps:$4 sm:$0xff]   ;;  %v3989_v10 = vld [vmem:[#allocation2 + $0x3c0] ss:$16 sps:$4 sm:$0xff]  }
  0x5a   :  { %1720 = vmatprep.subr.bf16.mxu0 %v3901_v11  ;;  %2172 = vmatprep.subr.bf16.mxu1 %v3904_v12  ;;  %v3992_v11 = vld [vmem:[#allocation2 + $0x3c8] ss:$16 sps:$4 sm:$0xff]   ;;  %v3997_v12 = vld [vmem:[#allocation2 + $0x3e4] ss:$16 sps:$4 sm:$0xff]  }
  0x5c   :  { %1646 = vmatmul.mubr.bf16.gmra.mrb[4].mxu0 %v3898_v13  ;;  %2098 = vmatmul.mubr.bf16.gmra.mrb[4].mxu1 %v3898_v13  ;;  %v4000_v13 = vld [vmem:[#allocation2 + $0x3ec] ss:$16 sps:$4 sm:$0xff]  }
  0x5d   :  { %1721 = vmatpush1.bf16.msra.mxu0 %v3899_v14  ;;  %2173 = vmatpush1.bf16.msra.mxu1 %v3902_v15  ;;  %v4003_v14 = vld [vmem:[%s4692_s0 + $0xc] ss:$28 sps:$4 sm:$0xff]   ;;  %v3995_v15 = vld [vmem:[#allocation2 + $0x3e0] ss:$16 sps:$4 sm:$0xff]  }
  0x5e   :  { %1722 = vmatprep.subr.bf16.mxu0 %v3907_v16  ;;  %2174 = vmatprep.subr.bf16.mxu1 %v3910_v17  ;;  %v3998_v16 = vld [vmem:[#allocation2 + $0x3e8] ss:$16 sps:$4 sm:$0xff]   ;;  %v4006_v17 = vld [vmem:[#allocation2 + $0x404] ss:$16 sps:$4 sm:$0xff]  }
  0x5f   :  { %1655 = vmatprep.mubr.bf16.mxu0 %v3911_v18  ;;  %2107 = vmatprep.mubr.bf16.mxu1 %v3911_v18  ;;  %v4009_v18 = vld [vmem:[#allocation2 + $0x40c] ss:$16 sps:$4 sm:$0xff]  }
  0x61   :  { %1723 = vmatpush1.bf16.msra.mxu0 %v3905_v19  ;;  %2175 = vmatpush1.bf16.msra.mxu1 %v3908_v20  ;;  %v4001_v19 = vld [vmem:[%s4692_s0 + $0x8] ss:$28 sps:$4 sm:$0xff]   ;;  %v4004_v20 = vld [vmem:[#allocation2 + $0x400] ss:$16 sps:$4 sm:$0xff]  }
  0x62   :  { %1724 = vmatprep.subr.bf16.mxu0 %v3916_v21  ;;  %2176 = vmatprep.subr.bf16.mxu1 %v3919_v22  ;;  %v4007_v21 = vld [vmem:[#allocation2 + $0x408] ss:$16 sps:$4 sm:$0xff]   ;;  %v4012_v22 = vld [vmem:[#allocation2 + $0x424] ss:$16 sps:$4 sm:$0xff]  }
  0x64   :  { %1656 = vmatmul.mubr.bf16.gmra.mrb[8].mxu0 %v3913_v23  ;;  %2108 = vmatmul.mubr.bf16.gmra.mrb[8].mxu1 %v3913_v23  ;;  %v4015_v23 = vld [vmem:[#allocation2 + $0x42c] ss:$16 sps:$4 sm:$0xff]  }
  0x65   :  { %1725 = vmatpush1.bf16.msra.mxu0 %v3914_v24  ;;  %2177 = vmatpush1.bf16.msra.mxu1 %v3917_v25  ;;  %v4016_v24 = vld [vmem:[%s4692_s0 + $0x44] ss:$28 sps:$4 sm:$0xff]  }
  0x66   :  { %1726 = vmatprep.subr.bf16.mxu0 %v3922_v26  ;;  %2178 = vmatprep.subr.bf16.mxu1 %v3925_v27  ;;  %v4010_v25 = vld [vmem:[#allocation2 + $0x420] ss:$16 sps:$4 sm:$0xff]   ;;  %v4013_v26 = vld [vmem:[#allocation2 + $0x428] ss:$16 sps:$4 sm:$0xff]   ;;  %v4021_v27 = vld [vmem:[#allocation2 + $0x444] ss:$16 sps:$4 sm:$0xff]  }
  0x67   :  { %1665 = vmatprep.mubr.bf16.mxu0 %v3926_v28  ;;  %2117 = vmatprep.mubr.bf16.mxu1 %v3926_v28  ;;  %v4024_v28 = vld [vmem:[#allocation2 + $0x44c] ss:$16 sps:$4 sm:$0xff]  }
  0x69   :  { %1727 = vmatpush1.bf16.msra.mxu0 %v3920_v29  ;;  %2179 = vmatpush1.bf16.msra.mxu1 %v3923_v30  ;;  %v4018_v29 = vld [vmem:[%s4692_s0 + $0x40] ss:$28 sps:$4 sm:$0xff]  }
  0x6a   :  { %1728 = vmatprep.subr.bf16.mxu0 %v3931_v31  ;;  %2180 = vmatprep.subr.bf16.mxu1 %v3934_v32  ;;  %v4019_v30 = vld [vmem:[#allocation2 + $0x440] ss:$16 sps:$4 sm:$0xff]   ;;  %v4022_v31 = vld [vmem:[#allocation2 + $0x448] ss:$16 sps:$4 sm:$0xff]   ;;  %v4027_v32 = vld [vmem:[#allocation2 + $0x464] ss:$16 sps:$4 sm:$0xff]  }
  0x6c   :  { %1666 = vmatmul.mubr.bf16.gmra.mrb[12].mxu0 %v3928_v33  ;;  %2118 = vmatmul.mubr.bf16.gmra.mrb[12].mxu1 %v3928_v33  ;;  %v4030_v33 = vld [vmem:[#allocation2 + $0x46c] ss:$16 sps:$4 sm:$0xff]  }
  0x6d   :  { %1729 = vmatpush1.bf16.msra.mxu0 %v3929_v34  ;;  %2181 = vmatpush1.bf16.msra.mxu1 %v3932_v35  ;;  %v4031_v34 = vld [vmem:[%s4692_s0 + $0x7c] ss:$28 sps:$4 sm:$0xff]   ;;  %v4025_v35 = vld [vmem:[#allocation2 + $0x460] ss:$16 sps:$4 sm:$0xff]  }
  0x6e   :  { %1730 = vmatprep.subr.bf16.mxu0 %v3937_v36  ;;  %2182 = vmatprep.subr.bf16.mxu1 %v3940_v37  ;;  %v4028_v36 = vld [vmem:[#allocation2 + $0x468] ss:$16 sps:$4 sm:$0xff]   ;;  %v4036_v37 = vld [vmem:[#allocation2 + $0x484] ss:$16 sps:$4 sm:$0xff]  }
  0x6f   :  { %1675 = vmatprep.mubr.bf16.mxu0 %v3941_v38  ;;  %2127 = vmatprep.mubr.bf16.mxu1 %v3941_v38  ;;  %v4039_v38 = vld [vmem:[#allocation2 + $0x48c] ss:$16 sps:$4 sm:$0xff]  }
  0x71   :  { %1731 = vmatpush1.bf16.msra.mxu0 %v3935_v39  ;;  %2183 = vmatpush1.bf16.msra.mxu1 %v3938_v40  ;;  %v4033_v39 = vld [vmem:[%s4692_s0 + $0x78] ss:$28 sps:$4 sm:$0xff]   ;;  %v4034_v40 = vld [vmem:[#allocation2 + $0x480] ss:$16 sps:$4 sm:$0xff]  }
  0x72   :  { %1732 = vmatprep.subr.bf16.mxu0 %v3946_v41  ;;  %2184 = vmatprep.subr.bf16.mxu1 %v3949_v42  ;;  %v4037_v41 = vld [vmem:[#allocation2 + $0x488] ss:$16 sps:$4 sm:$0xff]   ;;  %v4042_v42 = vld [vmem:[#allocation2 + $0x4a4] ss:$16 sps:$4 sm:$0xff]  }
  0x74   :  { %1676 = vmatmul.mubr.bf16.gmra.mrb[16].mxu0 %v3943_v43  ;;  %2128 = vmatmul.mubr.bf16.gmra.mrb[16].mxu1 %v3943_v43  ;;  %v4045_v43 = vld [vmem:[#allocation2 + $0x4ac] ss:$16 sps:$4 sm:$0xff]  }
  0x75   :  { %1733 = vmatpush1.bf16.msra.mxu0 %v3944_v44  ;;  %2185 = vmatpush1.bf16.msra.mxu1 %v3947_v45  ;;  %v4046_v44 = vld [vmem:[%s4692_s0 + $0xb4] ss:$28 sps:$4 sm:$0xff]  }
  0x76   :  { %1734 = vmatprep.subr.bf16.mxu0 %v3952_v46  ;;  %2186 = vmatprep.subr.bf16.mxu1 %v3955_v47  ;;  %v4040_v45 = vld [vmem:[#allocation2 + $0x4a0] ss:$16 sps:$4 sm:$0xff]   ;;  %v4043_v46 = vld [vmem:[#allocation2 + $0x4a8] ss:$16 sps:$4 sm:$0xff]   ;;  %v4051_v47 = vld [vmem:[#allocation2 + $0x4c4] ss:$16 sps:$4 sm:$0xff]  }
  0x77   :  { %1685 = vmatprep.mubr.bf16.mxu0 %v3956_v48  ;;  %2137 = vmatprep.mubr.bf16.mxu1 %v3956_v48  ;;  %v4054_v48 = vld [vmem:[#allocation2 + $0x4cc] ss:$16 sps:$4 sm:$0xff]  }
  0x79   :  { %1735 = vmatpush1.bf16.msra.mxu0 %v3950_v49  ;;  %2187 = vmatpush1.bf16.msra.mxu1 %v3953_v50  ;;  %v4048_v49 = vld [vmem:[%s4692_s0 + $0xb0] ss:$28 sps:$4 sm:$0xff]  }
  0x7a   :  { %1736 = vmatprep.subr.bf16.mxu0 %v3961_v51  ;;  %2188 = vmatprep.subr.bf16.mxu1 %v3964_v52  ;;  %v4049_v50 = vld [vmem:[#allocation2 + $0x4c0] ss:$16 sps:$4 sm:$0xff]   ;;  %v4052_v51 = vld [vmem:[#allocation2 + $0x4c8] ss:$16 sps:$4 sm:$0xff]   ;;  %v4057_v52 = vld [vmem:[#allocation2 + $0x4e4] ss:$16 sps:$4 sm:$0xff]  }
  0x7c   :  { %1686 = vmatmul.mubr.bf16.gmra.mrb[20].mxu0 %v3958_v53  ;;  %2138 = vmatmul.mubr.bf16.gmra.mrb[20].mxu1 %v3958_v53  ;;  %v4060_v53 = vld [vmem:[#allocation2 + $0x4ec] ss:$16 sps:$4 sm:$0xff]  }
  0x7d   :  { %1737 = vmatpush1.bf16.msra.mxu0 %v3959_v54  ;;  %2189 = vmatpush1.bf16.msra.mxu1 %v3962_v55  ;;  %v4061_v54 = vld [vmem:[%s4692_s0 + $0xec] ss:$28 sps:$4 sm:$0xff]   ;;  %v4055_v55 = vld [vmem:[#allocation2 + $0x4e0] ss:$16 sps:$4 sm:$0xff]  }
  0x7e   :  { %1738 = vmatprep.subr.bf16.mxu0 %v3967_v56  ;;  %2190 = vmatprep.subr.bf16.mxu1 %v3970_v57  ;;  %v4058_v56 = vld [vmem:[#allocation2 + $0x4e8] ss:$16 sps:$4 sm:$0xff]   ;;  %v4066_v57 = vld [vmem:[#allocation2 + $0x504] ss:$16 sps:$4 sm:$0xff]  }
  0x7f   :  { %1695 = vmatprep.mubr.bf16.mxu0 %v3971_v58  ;;  %2147 = vmatprep.mubr.bf16.mxu1 %v3971_v58  ;;  %v4069_v58 = vld [vmem:[#allocation2 + $0x50c] ss:$16 sps:$4 sm:$0xff]  }
  0x81   :  { %1739 = vmatpush1.bf16.msra.mxu0 %v3965_v59  ;;  %2191 = vmatpush1.bf16.msra.mxu1 %v3968_v60  ;;  %v4063_v59 = vld [vmem:[%s4692_s0 + $0xe8] ss:$28 sps:$4 sm:$0xff]   ;;  %v4064_v60 = vld [vmem:[#allocation2 + $0x500] ss:$16 sps:$4 sm:$0xff]  }
  0x82   :  { %1740 = vmatprep.subr.bf16.mxu0 %v3976_v61  ;;  %2192 = vmatprep.subr.bf16.mxu1 %v3979_v62  ;;  %v4067_v61 = vld [vmem:[#allocation2 + $0x508] ss:$16 sps:$4 sm:$0xff]   ;;  %v4072_v62 = vld [vmem:[#allocation2 + $0x524] ss:$16 sps:$4 sm:$0xff]  }
  0x84   :  { %1696 = vmatmul.mubr.bf16.gmra.mrb[24].mxu0 %v3973_v63  ;;  %2148 = vmatmul.mubr.bf16.gmra.mrb[24].mxu1 %v3973_v63  ;;  %v4075_v63 = vld [vmem:[#allocation2 + $0x52c] ss:$16 sps:$4 sm:$0xff]  }
  0x85   :  { %1741 = vmatpush1.bf16.msra.mxu0 %v3974_v0  ;;  %2193 = vmatpush1.bf16.msra.mxu1 %v3977_v1  ;;  %v4070_v0 = vld [vmem:[#allocation2 + $0x520] ss:$16 sps:$4 sm:$0xff]  }
  0x86   :  { %1742 = vmatprep.subr.bf16.mxu0 %v3982_v2  ;;  %2194 = vmatprep.subr.bf16.mxu1 %v3985_v3  ;;  %v4076_v1 = vld [vmem:[%s4692_s0 + $0x124] ss:$28 sps:$4 sm:$0xff]   ;;  %v4073_v2 = vld [vmem:[#allocation2 + $0x528] ss:$16 sps:$4 sm:$0xff]  }
  0x87   :  { %1705 = vmatprep.mubr.bf16.mxu0 %v3986_v4  ;;  %2157 = vmatprep.mubr.bf16.mxu1 %v3986_v4  ;;  %v4081_v3 = vld [vmem:[#allocation2 + $0x544] ss:$16 sps:$4 sm:$0xff]   ;;  %v4078_v4 = vld [vmem:[%s4692_s0 + $0x120] ss:$28 sps:$4 sm:$0xff]  }
  0x89   :  { %1743 = vmatpush1.bf16.msra.mxu0 %v3980_v5  ;;  %2195 = vmatpush1.bf16.msra.mxu1 %v3983_v6  ;;  %v4084_v5 = vld [vmem:[#allocation2 + $0x54c] ss:$16 sps:$4 sm:$0xff]   ;;  %v4079_v6 = vld [vmem:[#allocation2 + $0x540] ss:$16 sps:$4 sm:$0xff]  }
  0x8a   :  { %1744 = vmatprep.subr.bf16.mxu0 %v3991_v7  ;;  %2196 = vmatprep.subr.bf16.mxu1 %v3994_v8  ;;  %v4082_v7 = vld [vmem:[#allocation2 + $0x548] ss:$16 sps:$4 sm:$0xff]   ;;  %v4087_v8 = vld [vmem:[#allocation2 + $0x564] ss:$16 sps:$4 sm:$0xff]  }
  0x8c   :  { %1706 = vmatmul.mubr.bf16.gmra.mrb[28].mxu0 %v3988_v9  ;;  %2158 = vmatmul.mubr.bf16.gmra.mrb[28].mxu1 %v3988_v9  ;;  %v4090_v9 = vld [vmem:[#allocation2 + $0x56c] ss:$16 sps:$4 sm:$0xff]  }
  0x8d   :  { %1745 = vmatpush1.bf16.msra.mxu0 %v3989_v10  ;;  %2197 = vmatpush1.bf16.msra.mxu1 %v3992_v11  ;;  %v4091_v10 = vld [vmem:[%s4692_s0 + $0x15c] ss:$28 sps:$4 sm:$0xff]   ;;  %v4085_v11 = vld [vmem:[#allocation2 + $0x560] ss:$16 sps:$4 sm:$0xff]  }
  0x8e   :  { %1746 = vmatprep.subr.bf16.mxu0 %v3997_v12  ;;  %2198 = vmatprep.subr.bf16.mxu1 %v4000_v13  ;;  %v4088_v12 = vld [vmem:[#allocation2 + $0x568] ss:$16 sps:$4 sm:$0xff]   ;;  %v4096_v13 = vld [vmem:[#allocation2 + $0x584] ss:$16 sps:$4 sm:$0xff]  }
  0x8f   :  { %1748 = vmatprep.mubr.bf16.mxu0 %v4003_v14  ;;  %2200 = vmatprep.mubr.bf16.mxu1 %v4003_v14  ;;  %v4099_v14 = vld [vmem:[#allocation2 + $0x58c] ss:$16 sps:$4 sm:$0xff]  }
  0x91   :  { %1747 = vmatpush1.bf16.msra.mxu0 %v3995_v15  ;;  %2199 = vmatpush1.bf16.msra.mxu1 %v3998_v16  ;;  %v4093_v15 = vld [vmem:[%s4692_s0 + $0x158] ss:$28 sps:$4 sm:$0xff]   ;;  %v4094_v16 = vld [vmem:[#allocation2 + $0x580] ss:$16 sps:$4 sm:$0xff]  }
  0x92   :  { %1829 = vmatprep.subr.bf16.mxu0 %v4006_v17  ;;  %2281 = vmatprep.subr.bf16.mxu1 %v4009_v18  ;;  %v4097_v17 = vld [vmem:[#allocation2 + $0x588] ss:$16 sps:$4 sm:$0xff]   ;;  %v4102_v18 = vld [vmem:[#allocation2 + $0x5a4] ss:$16 sps:$4 sm:$0xff]  }
  0x94   :  { %1749 = vmatmul.mubr.bf16.vlgmr.msra.gmra.mrb[0].mxu0 %v4001_v19  ;;  %2201 = vmatmul.mubr.bf16.vlgmr.msra.gmra.mrb[0].mxu1 %v4001_v19  ;;  %v4105_v19 = vld [vmem:[#allocation2 + $0x5ac] ss:$16 sps:$4 sm:$0xff]  }
  0x95   :  { %1830 = vmatpush1.bf16.msra.mxu0 %v4004_v20  ;;  %2282 = vmatpush1.bf16.msra.mxu1 %v4007_v21  ;;  %v4106_v20 = vld [vmem:[%s4692_s0 + $0x194] ss:$28 sps:$4 sm:$0xff]  }
  0x96   :  { %1831 = vmatprep.subr.bf16.mxu0 %v4012_v22  ;;  %2283 = vmatprep.subr.bf16.mxu1 %v4015_v23  ;;  %v4100_v21 = vld [vmem:[#allocation2 + $0x5a0] ss:$16 sps:$4 sm:$0xff]   ;;  %v4103_v22 = vld [vmem:[#allocation2 + $0x5a8] ss:$16 sps:$4 sm:$0xff]   ;;  %v4111_v23 = vld [vmem:[#allocation2 + $0x5c4] ss:$16 sps:$4 sm:$0xff]  }
  0x97   :  { %1758 = vmatprep.mubr.bf16.mxu0 %v4016_v24  ;;  %2210 = vmatprep.mubr.bf16.mxu1 %v4016_v24  ;;  %v4114_v24 = vld [vmem:[#allocation2 + $0x5cc] ss:$16 sps:$4 sm:$0xff]  }
  0x99   :  { %1832 = vmatpush1.bf16.msra.mxu0 %v4010_v25  ;;  %2284 = vmatpush1.bf16.msra.mxu1 %v4013_v26  ;;  %v4108_v25 = vld [vmem:[%s4692_s0 + $0x190] ss:$28 sps:$4 sm:$0xff]  }
  0x9a   :  { %1833 = vmatprep.subr.bf16.mxu0 %v4021_v27  ;;  %2285 = vmatprep.subr.bf16.mxu1 %v4024_v28  ;;  %v4109_v26 = vld [vmem:[#allocation2 + $0x5c0] ss:$16 sps:$4 sm:$0xff]   ;;  %v4112_v27 = vld [vmem:[#allocation2 + $0x5c8] ss:$16 sps:$4 sm:$0xff]   ;;  %v4117_v28 = vld [vmem:[#allocation2 + $0x5e4] ss:$16 sps:$4 sm:$0xff]  }
  0x9c   :  { %1759 = vmatmul.mubr.bf16.gmra.mrb[4].mxu0 %v4018_v29  ;;  %2211 = vmatmul.mubr.bf16.gmra.mrb[4].mxu1 %v4018_v29  ;;  %v4120_v29 = vld [vmem:[#allocation2 + $0x5ec] ss:$16 sps:$4 sm:$0xff]  }
  0x9d   :  { %1834 = vmatpush1.bf16.msra.mxu0 %v4019_v30  ;;  %2286 = vmatpush1.bf16.msra.mxu1 %v4022_v31  ;;  %v4123_v30 = vld [vmem:[%s4692_s0 + $0x14] ss:$28 sps:$4 sm:$0xff]  }
  0x9e   :  { %1835 = vmatprep.subr.bf16.mxu0 %v4027_v32  ;;  %2287 = vmatprep.subr.bf16.mxu1 %v4030_v33  ;;  %v4115_v31 = vld [vmem:[#allocation2 + $0x5e0] ss:$16 sps:$4 sm:$0xff]   ;;  %v4118_v32 = vld [vmem:[#allocation2 + $0x5e8] ss:$16 sps:$4 sm:$0xff]   ;;  %v4126_v33 = vld [vmem:[#allocation2 + $0x604] ss:$16 sps:$4 sm:$0xff]  }
  0x9f   :  { %1768 = vmatprep.mubr.bf16.mxu0 %v4031_v34  ;;  %2220 = vmatprep.mubr.bf16.mxu1 %v4031_v34  ;;  %v4129_v34 = vld [vmem:[#allocation2 + $0x60c] ss:$16 sps:$4 sm:$0xff]  }
  0xa1   :  { %1836 = vmatpush1.bf16.msra.mxu0 %v4025_v35  ;;  %2288 = vmatpush1.bf16.msra.mxu1 %v4028_v36  ;;  %v4121_v35 = vld [vmem:[%s4692_s0 + $0x10] ss:$28 sps:$4 sm:$0xff]  }
  0xa2   :  { %1837 = vmatprep.subr.bf16.mxu0 %v4036_v37  ;;  %2289 = vmatprep.subr.bf16.mxu1 %v4039_v38  ;;  %v4124_v36 = vld [vmem:[#allocation2 + $0x600] ss:$16 sps:$4 sm:$0xff]   ;;  %v4127_v37 = vld [vmem:[#allocation2 + $0x608] ss:$16 sps:$4 sm:$0xff]  }
  0xa3   :  { %v4130_v38 = vld [vmem:[%s4692_s0 + $0x4c] ss:$28 sps:$4 sm:$0xff]  }
  0xa4   :  { %1769 = vmatmul.mubr.bf16.gmra.mrb[8].mxu0 %v4033_v39  ;;  %2221 = vmatmul.mubr.bf16.gmra.mrb[8].mxu1 %v4033_v39  ;;  %v4159_v39 = vld [vmem:[%s4695_s3 + $0x40] sm:$0xff]  }
  0xa5   :  { %1838 = vmatpush1.bf16.msra.mxu0 %v4034_v40  ;;  %2290 = vmatpush1.bf16.msra.mxu1 %v4037_v41  ;;  %v4161_v40 = vld [vmem:[%s4695_s3 + $0xc0] sm:$0xff]  }
  0xa6   :  { %1839 = vmatprep.subr.bf16.mxu0 %v4042_v42  ;;  %2291 = vmatprep.subr.bf16.mxu1 %v4045_v43  ;;  %v4132_v41 = vld [vmem:[%s4692_s0 + $0x48] ss:$28 sps:$4 sm:$0xff]   ;;  %v4135_v43 = vld [vmem:[%s4692_s0 + $0x80] ss:$28 sps:$4 sm:$0xff]  }
  0xa7   :  { %1778 = vmatprep.mubr.bf16.mxu0 %v4046_v44  ;;  %2230 = vmatprep.mubr.bf16.mxu1 %v4046_v44  ;;  %v4133_v42 = vld [vmem:[%s4692_s0 + $0x84] ss:$28 sps:$4 sm:$0xff]   ;;  %v4136_v44 = vld [vmem:[%s4692_s0 + $0xbc] ss:$28 sps:$4 sm:$0xff]  }
  0xa9   :  { %1840 = vmatpush1.bf16.msra.mxu0 %v4040_v45  ;;  %2292 = vmatpush1.bf16.msra.mxu1 %v4043_v46  ;;  %v4138_v45 = vld [vmem:[%s4692_s0 + $0xb8] ss:$28 sps:$4 sm:$0xff]  }
  0xaa   :  { %1841 = vmatprep.subr.bf16.mxu0 %v4051_v47  ;;  %2293 = vmatprep.subr.bf16.mxu1 %v4054_v48  ;;  %v4139_v46 = vld [vmem:[%s4692_s0 + $0xf4] ss:$28 sps:$4 sm:$0xff]   ;;  %v4142_v48 = vld [vmem:[%s4692_s0 + $0x12c] ss:$28 sps:$4 sm:$0xff]  }
  0xab   :  { %v4141_v47 = vld [vmem:[%s4692_s0 + $0xf0] ss:$28 sps:$4 sm:$0xff]  }
  0xac   :  { %1779 = vmatmul.mubr.bf16.gmra.mrb[12].mxu0 %v4048_v49  ;;  %2231 = vmatmul.mubr.bf16.gmra.mrb[12].mxu1 %v4048_v49  ;;  %v4144_v49 = vld [vmem:[%s4692_s0 + $0x128] ss:$28 sps:$4 sm:$0xff]  }
  0xad   :  { %1842 = vmatpush1.bf16.msra.mxu0 %v4049_v50  ;;  %2294 = vmatpush1.bf16.msra.mxu1 %v4052_v51  ;;  %v4145_v50 = vld [vmem:[%s4692_s0 + $0x164] ss:$28 sps:$4 sm:$0xff]  }
  0xae   :  { %1843 = vmatprep.subr.bf16.mxu0 %v4057_v52  ;;  %2295 = vmatprep.subr.bf16.mxu1 %v4060_v53  ;;  %v4147_v51 = vld [vmem:[%s4692_s0 + $0x160] ss:$28 sps:$4 sm:$0xff]   ;;  %v4150_v53 = vld [vmem:[%s4692_s0 + $0x198] ss:$28 sps:$4 sm:$0xff]  }
  0xaf   :  { %1788 = vmatprep.mubr.bf16.mxu0 %v4061_v54  ;;  %2240 = vmatprep.mubr.bf16.mxu1 %v4061_v54  ;;  %v4148_v52 = vld [vmem:[%s4692_s0 + $0x19c] ss:$28 sps:$4 sm:$0xff]   ;;  %v4242_v54 = vmov 0  }
  0xb1   :  { %1844 = vmatpush1.bf16.msra.mxu0 %v4055_v55  ;;  %2296 = vmatpush1.bf16.msra.mxu1 %v4058_v56  ;;  %v4151_v55 = vld [vmem:[%s4692_s0 + $0x18] ss:$28 sps:$4 sm:$0xff]   ;;  %v4160_v56 = vld [vmem:[%s4695_s3] sm:$0xff]  }
  0xb2   :  { %1845 = vmatprep.subr.bf16.mxu0 %v4066_v57  ;;  %2297 = vmatprep.subr.bf16.mxu1 %v4069_v58  ;;  %v4162_v57 = vld [vmem:[%s4695_s3 + $0x80] sm:$0xff]   ;;  %v4163_v58 = vld [vmem:[%s4695_s3 + $0x48] sm:$0xff]  }
  0xb4   :  { %1789 = vmatmul.mubr.bf16.gmra.mrb[16].mxu0 %v4063_v59  ;;  %2241 = vmatmul.mubr.bf16.gmra.mrb[16].mxu1 %v4063_v59  ;;  %v4165_v59 = vld [vmem:[%s4695_s3 + $0xc8] sm:$0xff]  }
  0xb5   :  { %1846 = vmatpush1.bf16.msra.mxu0 %v4064_v60  ;;  %2298 = vmatpush1.bf16.msra.mxu1 %v4067_v61  ;;  %v4164_v60 = vld [vmem:[%s4695_s3 + $0x8] sm:$0xff]  }
  0xb6   :  { %1847 = vmatprep.subr.bf16.mxu0 %v4072_v62  ;;  %2299 = vmatprep.subr.bf16.mxu1 %v4075_v63  ;;  %v4166_v61 = vld [vmem:[%s4695_s3 + $0x88] sm:$0xff]   ;;  %v4167_v62 = vld [vmem:[%s4695_s3 + $0x50] sm:$0xff]  }
  0xb7   :  { %1798 = vmatprep.mubr.bf16.mxu0 %v4076_v1  ;;  %2250 = vmatprep.mubr.bf16.mxu1 %v4076_v1  ;;  %v4169_v63 = vld [vmem:[%s4695_s3 + $0xd0] sm:$0xff]  }
  0xb8   :  { %v4168_v1 = vld [vmem:[%s4695_s3 + $0x10] sm:$0xff]  }
  0xb9   :  { %1848 = vmatpush1.bf16.msra.mxu0 %v4070_v0  ;;  %2300 = vmatpush1.bf16.msra.mxu1 %v4073_v2  ;;  %v4152_v0 = vld [vmem:[%s4692_s0 + $0x50] ss:$28 sps:$4 sm:$0xff]  }
  0xba   :  { %1849 = vmatprep.subr.bf16.mxu0 %v4081_v3  ;;  %2301 = vmatprep.subr.bf16.mxu1 %v4084_v5  ;;  %v4170_v2 = vld [vmem:[%s4695_s3 + $0x90] sm:$0xff]   ;;  %v4171_v3 = vld [vmem:[%s4695_s3 + $0x58] sm:$0xff]  }
  0xbb   :  { %v4172_v5 = vld [vmem:[%s4695_s3 + $0x18] sm:$0xff]  }
  0xbc   :  { %1799 = vmatmul.mubr.bf16.gmra.mrb[20].mxu0 %v4078_v4  ;;  %2251 = vmatmul.mubr.bf16.gmra.mrb[20].mxu1 %v4078_v4  ;;  %v4173_v4 = vld [vmem:[%s4695_s3 + $0xd8] sm:$0xff]  }
  0xbd   :  { %1850 = vmatpush1.bf16.msra.mxu0 %v4079_v6  ;;  %2302 = vmatpush1.bf16.msra.mxu1 %v4082_v7  ;;  %v4174_v6 = vld [vmem:[%s4695_s3 + $0x98] sm:$0xff]   ;;  %v4175_v7 = vld [vmem:[%s4695_s3 + $0x60] sm:$0xff]  }
  0xbe   :  { %1851 = vmatprep.subr.bf16.mxu0 %v4087_v8  ;;  %2303 = vmatprep.subr.bf16.mxu1 %v4090_v9  ;;  %v4177_v8 = vld [vmem:[%s4695_s3 + $0xe0] sm:$0xff]  }
  0xbf   :  { %1808 = vmatprep.mubr.bf16.mxu0 %v4091_v10  ;;  %2260 = vmatprep.mubr.bf16.mxu1 %v4091_v10  ;;  %v4153_v9 = vld [vmem:[%s4692_s0 + $0x88] ss:$28 sps:$4 sm:$0xff]  }
  0xc0   :  { %v4176_v10 = vld [vmem:[%s4695_s3 + $0x20] sm:$0xff]  }
  0xc1   :  { %1852 = vmatpush1.bf16.msra.mxu0 %v4085_v11  ;;  %2304 = vmatpush1.bf16.msra.mxu1 %v4088_v12  ;;  %v4178_v11 = vld [vmem:[%s4695_s3 + $0xa0] sm:$0xff]   ;;  %v4179_v12 = vld [vmem:[%s4695_s3 + $0x68] sm:$0xff]  }
  0xc2   :  { %1853 = vmatprep.subr.bf16.mxu0 %v4096_v13  ;;  %2305 = vmatprep.subr.bf16.mxu1 %v4099_v14  ;;  %v4181_v13 = vld [vmem:[%s4695_s3 + $0xe8] sm:$0xff]  }
  0xc3   :  { %v4180_v14 = vld [vmem:[%s4695_s3 + $0x28] sm:$0xff]  }
  0xc4   :  { %1809 = vmatmul.mubr.bf16.gmra.mrb[24].mxu0 %v4093_v15  ;;  %2261 = vmatmul.mubr.bf16.gmra.mrb[24].mxu1 %v4093_v15  ;;  %v4182_v15 = vld [vmem:[%s4695_s3 + $0xa8] sm:$0xff]  }
  0xc5   :  { %1854 = vmatpush1.bf16.msra.mxu0 %v4094_v16  ;;  %2306 = vmatpush1.bf16.msra.mxu1 %v4097_v17  ;;  %v4183_v16 = vld [vmem:[%s4695_s3 + $0x70] sm:$0xff]  }
  0xc6   :  { %1855 = vmatprep.subr.bf16.mxu0 %v4102_v18  ;;  %2307 = vmatprep.subr.bf16.mxu1 %v4105_v19  ;;  %v4185_v17 = vld [vmem:[%s4695_s3 + $0xf0] sm:$0xff]   ;;  %v4154_v18 = vld [vmem:[%s4692_s0 + $0xc0] ss:$28 sps:$4 sm:$0xff]  }
  0xc7   :  { %1818 = vmatprep.mubr.bf16.mxu0 %v4106_v20  ;;  %2270 = vmatprep.mubr.bf16.mxu1 %v4106_v20  ;;  %v4184_v19 = vld [vmem:[%s4695_s3 + $0x30] sm:$0xff]  }
  0xc8   :  { %v4186_v20 = vld [vmem:[%s4695_s3 + $0xb0] sm:$0xff]  }
  0xc9   :  { %1856 = vmatpush1.bf16.msra.mxu0 %v4100_v21  ;;  %2308 = vmatpush1.bf16.msra.mxu1 %v4103_v22  ;;  %v4155_v21 = vld [vmem:[%s4692_s0 + $0xf8] ss:$28 sps:$4 sm:$0xff]   ;;  %v4156_v22 = vld [vmem:[%s4692_s0 + $0x130] ss:$28 sps:$4 sm:$0xff]  }
  0xca   :  { %1857 = vmatprep.subr.bf16.mxu0 %v4111_v23  ;;  %2309 = vmatprep.subr.bf16.mxu1 %v4114_v24  ;;  %v4157_v23 = vld [vmem:[%s4692_s0 + $0x168] ss:$28 sps:$4 sm:$0xff]   ;;  %v4158_v24 = vld [vmem:[%s4692_s0 + $0x1a0] ss:$28 sps:$4 sm:$0xff]  }
  0xcc   :  { %1819 = vmatmul.mubr.bf16.gmra.mrb[28].mxu0 %v4108_v25  ;;  %2271 = vmatmul.mubr.bf16.gmra.mrb[28].mxu1 %v4108_v25  ;;  %v4187_v25 = vld [vmem:[%s4695_s3 + $0x78] sm:$0xff]  }
  0xcd   :  { %1858 = vmatpush1.bf16.msra.mxu0 %v4109_v26  ;;  %2310 = vmatpush1.bf16.msra.mxu1 %v4112_v27  ;;  %v4189_v26 = vld [vmem:[%s4695_s3 + $0xf8] sm:$0xff]  }
  0xce   :  { %1859 = vmatprep.subr.bf16.mxu0 %v4117_v28  ;;  %2311 = vmatprep.subr.bf16.mxu1 %v4120_v29  ;;  %v4188_v27 = vld [vmem:[%s4695_s3 + $0x38] sm:$0xff]   ;;  %v298_v29 = vlaneseq }
  0xcf   :  { %1861 = vmatprep.mubr.bf16.mxu0 %v4123_v30  ;;  %2313 = vmatprep.mubr.bf16.mxu1 %v4123_v30  ;;  %v4190_v28 = vld [vmem:[%s4695_s3 + $0xb8] sm:$0xff]  }
  0xd0   :  { %v299_v30 = vshrl.u32 %v298_v29, 7 }
  0xd1   :  { %1860 = vmatpush1.bf16.msra.mxu0 %v4115_v31  ;;  %2312 = vmatpush1.bf16.msra.mxu1 %v4118_v32 }
  0xd2   :  { %1942 = vmatprep.subr.bf16.mxu0 %v4126_v33  ;;  %2394 = vmatprep.subr.bf16.mxu1 %v4129_v34  ;;  %v300_v31 = vsub.s32 0, %v299_v30  ;;  %v308_v32 = vsub.s32 2, %v299_v30  ;;  %v296_v33 = vld [vmem:[%s4694_s2] sm:$0xf]  ;;  %v304_v34 = vsub.s32 1, %v299_v30 }
  0xd4   :  { %1862 = vmatmul.mubr.bf16.vlgmr.msra.gmra.mrb[0].mxu0 %v4121_v35  ;;  %2314 = vmatmul.mubr.bf16.vlgmr.msra.gmra.mrb[0].mxu1 %v4121_v35  ;;  %v312_v35 = vsub.s32 3, %v299_v30 }
  0xd5   :  { %1943 = vmatpush1.bf16.msra.mxu0 %v4124_v36  ;;  %2395 = vmatpush1.bf16.msra.mxu1 %v4127_v37  ;;  %v4587_v36 = vrot.slane %v296_v33, %v300_v31  ;;  %v4589_v37 = vrot.slane %v296_v33, %v308_v32 }
  0xd6   :  { %1871 = vmatprep.mubr.bf16.mxu0 %v4130_v38  ;;  %2323 = vmatprep.mubr.bf16.mxu1 %v4130_v38  ;;  %v4591_v38 = vrot.slane %v296_v33, %v304_v34 }
  0xd7   :  { %3394 = vmatprep.subr.bf16.mxu0 %v4159_v39  ;;  %3458 = vmatprep.subr.bf16.mxu1 %v4161_v40  ;;  %v4593_v39 = vrot.slane %v296_v33, %v312_v35 }
  0xdc   :  { %1872 = vmatmul.mubr.bf16.gmra.mrb[4].mxu0 %v4132_v41  ;;  %2324 = vmatmul.mubr.bf16.gmra.mrb[4].mxu1 %v4132_v41 }
  0xdd   :  { %1881 = vmatprep.mubr.bf16.mxu0 %v4133_v42  ;;  %2333 = vmatprep.mubr.bf16.mxu1 %v4133_v42 }
  0xe4   :  { %1882 = vmatmul.mubr.bf16.gmra.mrb[8].mxu0 %v4135_v43  ;;  %2334 = vmatmul.mubr.bf16.gmra.mrb[8].mxu1 %v4135_v43 }
  0xe5   :  { %1891 = vmatprep.mubr.bf16.mxu0 %v4136_v44  ;;  %2343 = vmatprep.mubr.bf16.mxu1 %v4136_v44 }
  0xec   :  { %1892 = vmatmul.mubr.bf16.gmra.mrb[12].mxu0 %v4138_v45  ;;  %2344 = vmatmul.mubr.bf16.gmra.mrb[12].mxu1 %v4138_v45 }
  0xed   :  { %1901 = vmatprep.mubr.bf16.mxu0 %v4139_v46  ;;  %2353 = vmatprep.mubr.bf16.mxu1 %v4139_v46 }
  0xf4   :  { %1902 = vmatmul.mubr.bf16.gmra.mrb[16].mxu0 %v4141_v47  ;;  %2354 = vmatmul.mubr.bf16.gmra.mrb[16].mxu1 %v4141_v47 }
  0xf5   :  { %1911 = vmatprep.mubr.bf16.mxu0 %v4142_v48  ;;  %2363 = vmatprep.mubr.bf16.mxu1 %v4142_v48 }
  0xfc   :  { %1912 = vmatmul.mubr.bf16.gmra.mrb[20].mxu0 %v4144_v49  ;;  %2364 = vmatmul.mubr.bf16.gmra.mrb[20].mxu1 %v4144_v49 }
  0xfd   :  { %1921 = vmatprep.mubr.bf16.mxu0 %v4145_v50  ;;  %2373 = vmatprep.mubr.bf16.mxu1 %v4145_v50 }
 0x104   :  { %1922 = vmatmul.mubr.bf16.gmra.mrb[24].mxu0 %v4147_v51  ;;  %2374 = vmatmul.mubr.bf16.gmra.mrb[24].mxu1 %v4147_v51 }
 0x105   :  { %1931 = vmatprep.mubr.bf16.mxu0 %v4148_v52  ;;  %2383 = vmatprep.mubr.bf16.mxu1 %v4148_v52 }
 0x10c   :  { %1932 = vmatmul.mubr.bf16.gmra.mrb[28].mxu0 %v4150_v53  ;;  %2384 = vmatmul.mubr.bf16.gmra.mrb[28].mxu1 %v4150_v53 }
 0x10d   :  { %1974 = vmatprep.mubr.bf16.mxu0 %v4242_v54  ;;  %2426 = vmatprep.mubr.bf16.mxu1 %v4242_v54 }
 0x114   :  { %3345 = vmatmul.mubr.msk.bf16.vlgmr.msra.gmra.mrb[0].mxu0 %vm1578_vm0, %v4151_v55  ;;  %3353 = vmatmul.mubr.msk.bf16.vlgmr.msra.gmra.mrb[0].mxu1 %vm1578_vm0, %v4151_v55 }
 0x115   :  { %1984 = vmatprep.mubr.bf16.mxu0 %v4242_v54  ;;  %2436 = vmatprep.mubr.bf16.mxu1 %v4242_v54 }
 0x116   :  { %3395 = vmatpush3.bf16.msra.mxu0 %v4160_v56  ;;  %3459 = vmatpush3.bf16.msra.mxu1 %v4162_v57 }
 0x117   :  { %3396 = vmatprep.subr.bf16.mxu0 %v4163_v58  ;;  %3460 = vmatprep.subr.bf16.mxu1 %v4165_v59 }
 0x11a   :  { %3397 = vmatpush3.bf16.msra.mxu0 %v4164_v60  ;;  %3461 = vmatpush3.bf16.msra.mxu1 %v4166_v61 }
 0x11b   :  { %3398 = vmatprep.subr.bf16.mxu0 %v4167_v62  ;;  %3462 = vmatprep.subr.bf16.mxu1 %v4169_v63 }
 0x11c   :  { %3346 = vmatmul.mubr.msk.bf16.gmra.mrb[4].mxu0 %vm1578_vm0, %v4152_v0  ;;  %3354 = vmatmul.mubr.msk.bf16.gmra.mrb[4].mxu1 %vm1578_vm0, %v4152_v0 }
 0x11d   :  { %1994 = vmatprep.mubr.bf16.mxu0 %v4242_v54  ;;  %2446 = vmatprep.mubr.bf16.mxu1 %v4242_v54 }
 0x11e   :  { %3399 = vmatpush3.bf16.msra.mxu0 %v4168_v1  ;;  %3463 = vmatpush3.bf16.msra.mxu1 %v4170_v2 }
 0x11f   :  { %3400 = vmatprep.subr.bf16.mxu0 %v4171_v3  ;;  %3464 = vmatprep.subr.bf16.mxu1 %v4173_v4 }
 0x122   :  { %3401 = vmatpush3.bf16.msra.mxu0 %v4172_v5  ;;  %3465 = vmatpush3.bf16.msra.mxu1 %v4174_v6 }
 0x123   :  { %3402 = vmatprep.subr.bf16.mxu0 %v4175_v7  ;;  %3466 = vmatprep.subr.bf16.mxu1 %v4177_v8 }
 0x124   :  { %3347 = vmatmul.mubr.msk.bf16.gmra.mrb[8].mxu0 %vm1578_vm0, %v4153_v9  ;;  %3355 = vmatmul.mubr.msk.bf16.gmra.mrb[8].mxu1 %vm1578_vm0, %v4153_v9 }
 0x125   :  { %2004 = vmatprep.mubr.bf16.mxu0 %v4242_v54  ;;  %2456 = vmatprep.mubr.bf16.mxu1 %v4242_v54 }
 0x126   :  { %3403 = vmatpush3.bf16.msra.mxu0 %v4176_v10  ;;  %3467 = vmatpush3.bf16.msra.mxu1 %v4178_v11 }
 0x127   :  { %3404 = vmatprep.subr.bf16.mxu0 %v4179_v12  ;;  %3468 = vmatprep.subr.bf16.mxu1 %v4181_v13 }
 0x12a   :  { %3405 = vmatpush3.bf16.msra.mxu0 %v4180_v14  ;;  %3469 = vmatpush3.bf16.msra.mxu1 %v4182_v15 }
 0x12b   :  { %3406 = vmatprep.subr.bf16.mxu0 %v4183_v16  ;;  %3470 = vmatprep.subr.bf16.mxu1 %v4185_v17 }
 0x12c   :  { %3348 = vmatmul.mubr.msk.bf16.gmra.mrb[12].mxu0 %vm1578_vm0, %v4154_v18  ;;  %3356 = vmatmul.mubr.msk.bf16.gmra.mrb[12].mxu1 %vm1578_vm0, %v4154_v18 }
 0x12d   :  { %2014 = vmatprep.mubr.bf16.mxu0 %v4242_v54  ;;  %2466 = vmatprep.mubr.bf16.mxu1 %v4242_v54 }
 0x12e   :  { %3407 = vmatpush3.bf16.msra.mxu0 %v4184_v19  ;;  %3471 = vmatpush3.bf16.msra.mxu1 %v4186_v20 }
 0x12f   :  { %3408 = vmatprep.subr.bf16.mxu0 %v4187_v25  ;;  %3472 = vmatprep.subr.bf16.mxu1 %v4189_v26 }
 0x132   :  { %3409 = vmatpush3.bf16.msra.mxu0 %v4188_v27  ;;  %3473 = vmatpush3.bf16.msra.mxu1 %v4190_v28 }
 0x134   :  { %3349 = vmatmul.mubr.msk.bf16.gmra.mrb[16].mxu0 %vm1578_vm0, %v4155_v21  ;;  %3357 = vmatmul.mubr.msk.bf16.gmra.mrb[16].mxu1 %vm1578_vm0, %v4155_v21 }
 0x135   :  { %2024 = vmatprep.mubr.bf16.mxu0 %v4242_v54  ;;  %2476 = vmatprep.mubr.bf16.mxu1 %v4242_v54 }
 0x13c   :  { %3350 = vmatmul.mubr.msk.bf16.gmra.mrb[20].mxu0 %vm1578_vm0, %v4156_v22  ;;  %3358 = vmatmul.mubr.msk.bf16.gmra.mrb[20].mxu1 %vm1578_vm0, %v4156_v22 }
 0x13d   :  { %2034 = vmatprep.mubr.bf16.mxu0 %v4242_v54  ;;  %2486 = vmatprep.mubr.bf16.mxu1 %v4242_v54 }
 0x144   :  { %3351 = vmatmul.mubr.msk.bf16.gmra.mrb[24].mxu0 %vm1578_vm0, %v4157_v23  ;;  %3359 = vmatmul.mubr.msk.bf16.gmra.mrb[24].mxu1 %vm1578_vm0, %v4157_v23 }
 0x145   :  { %2044 = vmatprep.mubr.bf16.mxu0 %v4242_v54  ;;  %2496 = vmatprep.mubr.bf16.mxu1 %v4242_v54 }
 0x14c   :  { %3352 = vmatmul.mubr.msk.bf16.gmra.mrb[28].mxu0 %vm1578_vm0, %v4158_v24  ;;  %3360 = vmatmul.mubr.msk.bf16.gmra.mrb[28].mxu1 %vm1578_vm0, %v4158_v24 }
 0x1e7   :  { %v1976_v40 = vpop.f32.mrb[0].mxu0  ;;  %v2428_v41 = vpop.f32.mrb[0].mxu1 }
 0x1e8   :  { %v3522_v42 = vadd.f32 %v1976_v40, %v4587_v36  ;;  %v3554_v43 = vadd.f32 %v2428_v41, %v4589_v37  ;;  %v1978_v44 = vpop.f32.mrb[1].mxu0  ;;  %v2430_v45 = vpop.f32.mrb[1].mxu1 }
 0x1e9   :  { %v3523_v46 = vadd.f32 %v1978_v44, %v4591_v38  ;;  %v3555_v47 = vadd.f32 %v2430_v45, %v4593_v39  ;;  %v1980_v48 = vpop.f32.mrb[2].mxu0  ;;  %v2432_v49 = vpop.f32.mrb[2].mxu1 }
 0x1ea   :  { %v3524_v50 = vadd.f32 %v1980_v48, %v4587_v36  ;;  %v3556_v51 = vadd.f32 %v2432_v49, %v4589_v37  ;;  %v1982_v52 = vpop.f32.mrb[3].mxu0  ;;  %v2434_v53 = vpop.f32.mrb[3].mxu1  ;;  %v2507_v56 = vmax.f32 %v3522_v42, 0.0  ;;  %v2509_v57 = vmax.f32 %v3554_v43, 0.0 }
 0x1eb   :  { %v3525_v54 = vadd.f32 %v1982_v52, %v4591_v38  ;;  %v3557_v55 = vadd.f32 %v2434_v53, %v4593_v39  ;;  %v2508_v60 = vmax.f32 %v3523_v46, 0.0  ;;  %v2510_v61 = vmax.f32 %v3555_v47, 0.0 }
 0x1ec   :  { %v2511_v58 = vmax.f32 %v3524_v50, 0.0  ;;  %v2513_v59 = vmax.f32 %v3556_v51, 0.0 }
 0x1ed   :  { %v2512_v62 = vmax.f32 %v3525_v54, 0.0  ;;  %v2514_v63 = vmax.f32 %v3557_v55, 0.0 }
 0x1ee   :  { %v2571_v0 = vpack.c.bf16 %v2511_v58, %v2507_v56  ;;  %v2573_v1 = vpack.c.bf16 %v2513_v59, %v2509_v57 }
 0x1ef   :  { %v2572_v2 = vpack.c.bf16 %v2512_v62, %v2508_v60  ;;  %v2574_v3 = vpack.c.bf16 %v2514_v63, %v2510_v61  ;;  %v1986_v4 = vpop.f32.mrb[4].mxu0  ;;  %v2438_v5 = vpop.f32.mrb[4].mxu1 }
 0x1f0   :  { %v3526_v6 = vadd.f32 %v1986_v4, %v4587_v36  ;;  %v3558_v7 = vadd.f32 %v2438_v5, %v4589_v37  ;;  %v1988_v8 = vpop.f32.mrb[5].mxu0  ;;  %v2440_v9 = vpop.f32.mrb[5].mxu1 }
 0x1f1   :  { %v3527_v10 = vadd.f32 %v1988_v8, %v4591_v38  ;;  %v3559_v11 = vadd.f32 %v2440_v9, %v4593_v39  ;;  %v1990_v12 = vpop.f32.mrb[6].mxu0  ;;  %v2442_v13 = vpop.f32.mrb[6].mxu1  ;;  %2898 = vmatprep.mubr.bf16.mxu0 %v2572_v2  ;;  %2995 = vmatprep.mubr.bf16.mxu1 %v2574_v3 }
 0x1f2   :  { %v3528_v14 = vadd.f32 %v1990_v12, %v4587_v36  ;;  %v3560_v15 = vadd.f32 %v2442_v13, %v4589_v37  ;;  %v1992_v16 = vpop.f32.mrb[7].mxu0  ;;  %v2444_v17 = vpop.f32.mrb[7].mxu1  ;;  %2899 = vmatmul.mubr.bf16.vlgmr.msra.gmra.mrb[32].mxu0 %v2571_v0  ;;  %2996 = vmatmul.mubr.bf16.vlgmr.msra.gmra.mrb[32].mxu1 %v2573_v1  ;;  %v2515_v20 = vmax.f32 %v3526_v6, 0.0  ;;  %v2517_v21 = vmax.f32 %v3558_v7, 0.0 }
 0x1f3   :  { %v3529_v18 = vadd.f32 %v1992_v16, %v4591_v38  ;;  %v3561_v19 = vadd.f32 %v2444_v17, %v4593_v39  ;;  %v2516_v24 = vmax.f32 %v3527_v10, 0.0  ;;  %v2518_v25 = vmax.f32 %v3559_v11, 0.0 }
 0x1f4   :  { %v2519_v22 = vmax.f32 %v3528_v14, 0.0  ;;  %v2521_v23 = vmax.f32 %v3560_v15, 0.0 }
 0x1f5   :  { %v2520_v26 = vmax.f32 %v3529_v18, 0.0  ;;  %v2522_v27 = vmax.f32 %v3561_v19, 0.0 }
 0x1f6   :  { %v2575_v28 = vpack.c.bf16 %v2519_v22, %v2515_v20  ;;  %v2577_v29 = vpack.c.bf16 %v2521_v23, %v2517_v21 }
 0x1f7   :  { %v2576_v30 = vpack.c.bf16 %v2520_v26, %v2516_v24  ;;  %v2578_v31 = vpack.c.bf16 %v2522_v27, %v2518_v25  ;;  %v1996_v32 = vpop.f32.mrb[8].mxu0  ;;  %v2448_v33 = vpop.f32.mrb[8].mxu1 }
 0x1f8   :  { %v3530_v34 = vadd.f32 %v1996_v32, %v4587_v36  ;;  %v3562_v35 = vadd.f32 %v2448_v33, %v4589_v37  ;;  %v1998_v40 = vpop.f32.mrb[9].mxu0  ;;  %v2450_v41 = vpop.f32.mrb[9].mxu1 }
 0x1f9   :  { %v3531_v42 = vadd.f32 %v1998_v40, %v4591_v38  ;;  %v3563_v43 = vadd.f32 %v2450_v41, %v4593_v39  ;;  %v2000_v44 = vpop.f32.mrb[10].mxu0  ;;  %v2452_v45 = vpop.f32.mrb[10].mxu1  ;;  %2906 = vmatprep.mubr.bf16.mxu0 %v2576_v30  ;;  %3003 = vmatprep.mubr.bf16.mxu1 %v2578_v31 }
 0x1fa   :  { %v3532_v46 = vadd.f32 %v2000_v44, %v4587_v36  ;;  %v3564_v47 = vadd.f32 %v2452_v45, %v4589_v37  ;;  %v2002_v48 = vpop.f32.mrb[11].mxu0  ;;  %v2454_v49 = vpop.f32.mrb[11].mxu1  ;;  %2907 = vmatmul.mubr.bf16.gmra.mrb[36].mxu0 %v2575_v28  ;;  %3004 = vmatmul.mubr.bf16.gmra.mrb[36].mxu1 %v2577_v29  ;;  %v2523_v52 = vmax.f32 %v3530_v34, 0.0  ;;  %v2525_v53 = vmax.f32 %v3562_v35, 0.0 }
 0x1fb   :  { %v3533_v50 = vadd.f32 %v2002_v48, %v4591_v38  ;;  %v3565_v51 = vadd.f32 %v2454_v49, %v4593_v39  ;;  %v2524_v56 = vmax.f32 %v3531_v42, 0.0  ;;  %v2526_v57 = vmax.f32 %v3563_v43, 0.0 }
 0x1fc   :  { %v2527_v54 = vmax.f32 %v3532_v46, 0.0  ;;  %v2529_v55 = vmax.f32 %v3564_v47, 0.0 }
 0x1fd   :  { %v2528_v58 = vmax.f32 %v3533_v50, 0.0  ;;  %v2530_v59 = vmax.f32 %v3565_v51, 0.0 }
 0x1fe   :  { %v2579_v60 = vpack.c.bf16 %v2527_v54, %v2523_v52  ;;  %v2581_v61 = vpack.c.bf16 %v2529_v55, %v2525_v53 }
 0x1ff   :  { %v2580_v62 = vpack.c.bf16 %v2528_v58, %v2524_v56  ;;  %v2582_v63 = vpack.c.bf16 %v2530_v59, %v2526_v57  ;;  %v2006_v0 = vpop.f32.mrb[12].mxu0  ;;  %v2458_v1 = vpop.f32.mrb[12].mxu1 }
 0x200   :  { %v3534_v2 = vadd.f32 %v2006_v0, %v4587_v36  ;;  %v3566_v3 = vadd.f32 %v2458_v1, %v4589_v37  ;;  %v2008_v4 = vpop.f32.mrb[13].mxu0  ;;  %v2460_v5 = vpop.f32.mrb[13].mxu1 }
 0x201   :  { %v3535_v6 = vadd.f32 %v2008_v4, %v4591_v38  ;;  %v3567_v7 = vadd.f32 %v2460_v5, %v4593_v39  ;;  %v2010_v8 = vpop.f32.mrb[14].mxu0  ;;  %v2462_v9 = vpop.f32.mrb[14].mxu1  ;;  %2914 = vmatprep.mubr.bf16.mxu0 %v2580_v62  ;;  %3011 = vmatprep.mubr.bf16.mxu1 %v2582_v63 }
 0x202   :  { %v3536_v10 = vadd.f32 %v2010_v8, %v4587_v36  ;;  %v3568_v11 = vadd.f32 %v2462_v9, %v4589_v37  ;;  %v2012_v12 = vpop.f32.mrb[15].mxu0  ;;  %v2464_v13 = vpop.f32.mrb[15].mxu1  ;;  %2915 = vmatmul.mubr.bf16.gmra.mrb[40].mxu0 %v2579_v60  ;;  %3012 = vmatmul.mubr.bf16.gmra.mrb[40].mxu1 %v2581_v61  ;;  %v2531_v16 = vmax.f32 %v3534_v2, 0.0  ;;  %v2533_v17 = vmax.f32 %v3566_v3, 0.0 }
 0x203   :  { %v3537_v14 = vadd.f32 %v2012_v12, %v4591_v38  ;;  %v3569_v15 = vadd.f32 %v2464_v13, %v4593_v39  ;;  %v2532_v20 = vmax.f32 %v3535_v6, 0.0  ;;  %v2534_v21 = vmax.f32 %v3567_v7, 0.0 }
 0x204   :  { %v2535_v18 = vmax.f32 %v3536_v10, 0.0  ;;  %v2537_v19 = vmax.f32 %v3568_v11, 0.0 }
 0x205   :  { %v2536_v22 = vmax.f32 %v3537_v14, 0.0  ;;  %v2538_v23 = vmax.f32 %v3569_v15, 0.0 }
 0x206   :  { %v2583_v24 = vpack.c.bf16 %v2535_v18, %v2531_v16  ;;  %v2585_v25 = vpack.c.bf16 %v2537_v19, %v2533_v17 }
 0x207   :  { %v2584_v26 = vpack.c.bf16 %v2536_v22, %v2532_v20  ;;  %v2586_v27 = vpack.c.bf16 %v2538_v23, %v2534_v21  ;;  %v2016_v28 = vpop.f32.mrb[16].mxu0  ;;  %v2468_v29 = vpop.f32.mrb[16].mxu1 }
 0x208   :  { %v3538_v30 = vadd.f32 %v2016_v28, %v4587_v36  ;;  %v3570_v31 = vadd.f32 %v2468_v29, %v4589_v37  ;;  %v2018_v32 = vpop.f32.mrb[17].mxu0  ;;  %v2470_v33 = vpop.f32.mrb[17].mxu1 }
 0x209   :  { %v3539_v34 = vadd.f32 %v2018_v32, %v4591_v38  ;;  %v3571_v35 = vadd.f32 %v2470_v33, %v4593_v39  ;;  %v2020_v40 = vpop.f32.mrb[18].mxu0  ;;  %v2472_v41 = vpop.f32.mrb[18].mxu1  ;;  %2922 = vmatprep.mubr.bf16.mxu0 %v2584_v26  ;;  %3019 = vmatprep.mubr.bf16.mxu1 %v2586_v27 }
 0x20a   :  { %v3540_v42 = vadd.f32 %v2020_v40, %v4587_v36  ;;  %v3572_v43 = vadd.f32 %v2472_v41, %v4589_v37  ;;  %v2022_v44 = vpop.f32.mrb[19].mxu0  ;;  %v2474_v45 = vpop.f32.mrb[19].mxu1  ;;  %2923 = vmatmul.mubr.bf16.gmra.mrb[44].mxu0 %v2583_v24  ;;  %3020 = vmatmul.mubr.bf16.gmra.mrb[44].mxu1 %v2585_v25  ;;  %v2539_v48 = vmax.f32 %v3538_v30, 0.0  ;;  %v2541_v49 = vmax.f32 %v3570_v31, 0.0 }
 0x20b   :  { %v3541_v46 = vadd.f32 %v2022_v44, %v4591_v38  ;;  %v3573_v47 = vadd.f32 %v2474_v45, %v4593_v39  ;;  %v2540_v52 = vmax.f32 %v3539_v34, 0.0  ;;  %v2542_v53 = vmax.f32 %v3571_v35, 0.0 }
 0x20c   :  { %v2543_v50 = vmax.f32 %v3540_v42, 0.0  ;;  %v2545_v51 = vmax.f32 %v3572_v43, 0.0 }
 0x20d   :  { %v2544_v54 = vmax.f32 %v3541_v46, 0.0  ;;  %v2546_v55 = vmax.f32 %v3573_v47, 0.0 }
 0x20e   :  { %v2587_v56 = vpack.c.bf16 %v2543_v50, %v2539_v48  ;;  %v2589_v57 = vpack.c.bf16 %v2545_v51, %v2541_v49 }
 0x20f   :  { %v2588_v58 = vpack.c.bf16 %v2544_v54, %v2540_v52  ;;  %v2590_v59 = vpack.c.bf16 %v2546_v55, %v2542_v53  ;;  %v2026_v60 = vpop.f32.mrb[20].mxu0  ;;  %v2478_v61 = vpop.f32.mrb[20].mxu1 }
 0x210   :  { %v3542_v62 = vadd.f32 %v2026_v60, %v4587_v36  ;;  %v3574_v63 = vadd.f32 %v2478_v61, %v4589_v37  ;;  %v2028_v0 = vpop.f32.mrb[21].mxu0  ;;  %v2480_v1 = vpop.f32.mrb[21].mxu1 }
 0x211   :  { %v3543_v2 = vadd.f32 %v2028_v0, %v4591_v38  ;;  %v3575_v3 = vadd.f32 %v2480_v1, %v4593_v39  ;;  %v2030_v4 = vpop.f32.mrb[22].mxu0  ;;  %v2482_v5 = vpop.f32.mrb[22].mxu1  ;;  %2930 = vmatprep.mubr.bf16.mxu0 %v2588_v58  ;;  %3027 = vmatprep.mubr.bf16.mxu1 %v2590_v59 }
 0x212   :  { %v3544_v6 = vadd.f32 %v2030_v4, %v4587_v36  ;;  %v3576_v7 = vadd.f32 %v2482_v5, %v4589_v37  ;;  %v2032_v8 = vpop.f32.mrb[23].mxu0  ;;  %v2484_v9 = vpop.f32.mrb[23].mxu1  ;;  %2931 = vmatmul.mubr.bf16.gmra.mrb[48].mxu0 %v2587_v56  ;;  %3028 = vmatmul.mubr.bf16.gmra.mrb[48].mxu1 %v2589_v57  ;;  %v2547_v12 = vmax.f32 %v3542_v62, 0.0  ;;  %v2549_v13 = vmax.f32 %v3574_v63, 0.0 }
 0x213   :  { %v3545_v10 = vadd.f32 %v2032_v8, %v4591_v38  ;;  %v3577_v11 = vadd.f32 %v2484_v9, %v4593_v39  ;;  %v2548_v16 = vmax.f32 %v3543_v2, 0.0  ;;  %v2550_v17 = vmax.f32 %v3575_v3, 0.0 }
 0x214   :  { %v2551_v14 = vmax.f32 %v3544_v6, 0.0  ;;  %v2553_v15 = vmax.f32 %v3576_v7, 0.0 }
 0x215   :  { %v2552_v18 = vmax.f32 %v3545_v10, 0.0  ;;  %v2554_v19 = vmax.f32 %v3577_v11, 0.0 }
 0x216   :  { %v2591_v20 = vpack.c.bf16 %v2551_v14, %v2547_v12  ;;  %v2593_v21 = vpack.c.bf16 %v2553_v15, %v2549_v13 }
 0x217   :  { %v2592_v22 = vpack.c.bf16 %v2552_v18, %v2548_v16  ;;  %v2594_v23 = vpack.c.bf16 %v2554_v19, %v2550_v17  ;;  %v2036_v24 = vpop.f32.mrb[24].mxu0  ;;  %v2488_v25 = vpop.f32.mrb[24].mxu1 }
 0x218   :  { %v3546_v26 = vadd.f32 %v2036_v24, %v4587_v36  ;;  %v3578_v27 = vadd.f32 %v2488_v25, %v4589_v37  ;;  %v2038_v28 = vpop.f32.mrb[25].mxu0  ;;  %v2490_v29 = vpop.f32.mrb[25].mxu1 }
 0x219   :  { %v3547_v30 = vadd.f32 %v2038_v28, %v4591_v38  ;;  %v3579_v31 = vadd.f32 %v2490_v29, %v4593_v39  ;;  %v2040_v32 = vpop.f32.mrb[26].mxu0  ;;  %v2492_v33 = vpop.f32.mrb[26].mxu1  ;;  %2938 = vmatprep.mubr.bf16.mxu0 %v2592_v22  ;;  %3035 = vmatprep.mubr.bf16.mxu1 %v2594_v23 }
 0x21a   :  { %v3548_v34 = vadd.f32 %v2040_v32, %v4587_v36  ;;  %v3580_v35 = vadd.f32 %v2492_v33, %v4589_v37  ;;  %v2042_v40 = vpop.f32.mrb[27].mxu0  ;;  %v2494_v41 = vpop.f32.mrb[27].mxu1  ;;  %2939 = vmatmul.mubr.bf16.gmra.mrb[52].mxu0 %v2591_v20  ;;  %3036 = vmatmul.mubr.bf16.gmra.mrb[52].mxu1 %v2593_v21  ;;  %v2555_v44 = vmax.f32 %v3546_v26, 0.0  ;;  %v2557_v45 = vmax.f32 %v3578_v27, 0.0 }
 0x21b   :  { %v3549_v42 = vadd.f32 %v2042_v40, %v4591_v38  ;;  %v3581_v43 = vadd.f32 %v2494_v41, %v4593_v39  ;;  %v2556_v48 = vmax.f32 %v3547_v30, 0.0  ;;  %v2558_v49 = vmax.f32 %v3579_v31, 0.0 }
 0x21c   :  { %v2559_v46 = vmax.f32 %v3548_v34, 0.0  ;;  %v2561_v47 = vmax.f32 %v3580_v35, 0.0 }
 0x21d   :  { %v2560_v50 = vmax.f32 %v3549_v42, 0.0  ;;  %v2562_v51 = vmax.f32 %v3581_v43, 0.0 }
 0x21e   :  { %v2595_v52 = vpack.c.bf16 %v2559_v46, %v2555_v44  ;;  %v2597_v53 = vpack.c.bf16 %v2561_v47, %v2557_v45 }
 0x21f   :  { %v2596_v54 = vpack.c.bf16 %v2560_v50, %v2556_v48  ;;  %v2598_v55 = vpack.c.bf16 %v2562_v51, %v2558_v49  ;;  %v2046_v56 = vpop.f32.mrb[28].mxu0  ;;  %v2498_v57 = vpop.f32.mrb[28].mxu1 }
 0x220   :  { %v3550_v58 = vadd.f32 %v2046_v56, %v4587_v36  ;;  %v3582_v59 = vadd.f32 %v2498_v57, %v4589_v37  ;;  %v2048_v60 = vpop.f32.mrb[29].mxu0  ;;  %v2500_v61 = vpop.f32.mrb[29].mxu1 }
 0x221   :  { %v3551_v62 = vadd.f32 %v2048_v60, %v4591_v38  ;;  %v3583_v63 = vadd.f32 %v2500_v61, %v4593_v39  ;;  %v2050_v0 = vpop.f32.mrb[30].mxu0  ;;  %v2502_v1 = vpop.f32.mrb[30].mxu1  ;;  %2946 = vmatprep.mubr.bf16.mxu0 %v2596_v54  ;;  %3043 = vmatprep.mubr.bf16.mxu1 %v2598_v55 }
 0x222   :  { %v3552_v2 = vadd.f32 %v2050_v0, %v4587_v36  ;;  %v3584_v3 = vadd.f32 %v2502_v1, %v4589_v37  ;;  %v2052_v4 = vpop.f32.mrb[31].mxu0  ;;  %v2504_v5 = vpop.f32.mrb[31].mxu1  ;;  %2947 = vmatmul.mubr.bf16.gmra.mrb[56].mxu0 %v2595_v52  ;;  %3044 = vmatmul.mubr.bf16.gmra.mrb[56].mxu1 %v2597_v53  ;;  %v2563_v8 = vmax.f32 %v3550_v58, 0.0  ;;  %v2565_v9 = vmax.f32 %v3582_v59, 0.0 }
 0x223   :  { %v3553_v6 = vadd.f32 %v2052_v4, %v4591_v38  ;;  %v3585_v7 = vadd.f32 %v2504_v5, %v4593_v39  ;;  %v2564_v12 = vmax.f32 %v3551_v62, 0.0  ;;  %v2566_v13 = vmax.f32 %v3583_v63, 0.0  ;;  %v4662_v39 = vld [vmem:[%s4696_s4] ss:$0 sm:$0xff]  ;;  %s4243_s4 = smov [#allocation5]  }
 0x224   :  { %v2567_v10 = vmax.f32 %v3552_v2, 0.0  ;;  %v2569_v11 = vmax.f32 %v3584_v3, 0.0  ;;  %s3081_s27 = sshll.u32 %s4243_s4, 4  ;;  %s3082_s27 = int_to_ptr.vmem [resolvable:$true] %s3081_s27 }
 0x225   :  { %v2568_v14 = vmax.f32 %v3553_v6, 0.0  ;;  %v2570_v15 = vmax.f32 %v3585_v7, 0.0  ;;  %s4213_s28 = scalar_lea.vmem %s3082_s27, 2048  ;;  %p4218_p9 = scmp.lt.s32.totalorder %s3082_s27, %s3082_s27 }
 0x226   :  { %v2599_v16 = vpack.c.bf16 %v2567_v10, %v2563_v8  ;;  %v2601_v36 = vpack.c.bf16 %v2569_v11, %v2565_v9  ;;  %p4214_p8 = scmp.ne.s32.totalorder %s3082_s27, %s4213_s28  ;;  %p4219_p10 = scmp.lt.s32.totalorder %s4213_s28, %s4213_s28 }
 0x227   :  { %v2600_v17 = vpack.c.bf16 %v2568_v14, %v2564_v12  ;;  %v2602_v37 = vpack.c.bf16 %v2570_v15, %v2566_v13 }
 0x228   :  { %p4220_p11 = por %p4219_p10, %p4218_p9 }
 0x229   :  { %2954 = vmatprep.mubr.bf16.mxu0 %v2600_v17  ;;  %3051 = vmatprep.mubr.bf16.mxu1 %v2602_v37 }
 0x22a   :  { %2955 = vmatmul.mubr.bf16.gmra.mrb[60].mxu0 %v2599_v16  ;;  %3052 = vmatmul.mubr.bf16.gmra.mrb[60].mxu1 %v2601_v36  ;;  %p4221_p12 = pnand %p4220_p11, %p4214_p8 }
 0x2c5   :  { %v3410_v18 = vpop.f32.mrb[32].mxu0  ;;  %v3474_v38 = vpop.f32.mrb[32].mxu1 }
 0x2c6   :  { %v3411_v19 = vpop.f32.mrb[33].mxu0  ;;  %v3475_v20 = vpop.f32.mrb[33].mxu1 }
 0x2c7   :  { %v3412_v21 = vadd.f32 %v3411_v19, %v3410_v18  ;;  %v3476_v22 = vadd.f32 %v3475_v20, %v3474_v38  ;;  %v3413_v23 = vpop.f32.mrb[34].mxu0  ;;  %v3477_v24 = vpop.f32.mrb[34].mxu1 }
 0x2c8   :  { %v3414_v25 = vpop.f32.mrb[35].mxu0  ;;  %v3478_v26 = vpop.f32.mrb[35].mxu1 }
 0x2c9   :  { %v2901_v27 = vadd.f32 %v3412_v21, %v4662_v39  ;;  %v3415_v28 = vadd.f32 %v3414_v25, %v3413_v23  ;;  %v3479_v29 = vadd.f32 %v3478_v26, %v3477_v24 }
 0x2cb   :  { %v2998_v30 = vadd.f32 %v3476_v22, %v2901_v27  ;;  %v2904_v31 = vadd.f32 %v3415_v28, %v4662_v39 }
 0x2cd   :  { %3060 = vst [vmem:[#allocation5] sm:$0xff] %v2998_v30  ;;  %v3001_v32 = vadd.f32 %v3479_v29, %v2904_v31  ;;  %v3416_v33 = vpop.f32.mrb[36].mxu0  ;;  %v3480_v34 = vpop.f32.mrb[36].mxu1 }
 0x2ce   :  { %v3417_v35 = vpop.f32.mrb[37].mxu0  ;;  %v3481_v40 = vpop.f32.mrb[37].mxu1 }
 0x2cf   :  { %3061 = vst [vmem:[#allocation5 + $0x8] sm:$0xff] %v3001_v32  ;;  %v3418_v41 = vadd.f32 %v3417_v35, %v3416_v33  ;;  %v3482_v42 = vadd.f32 %v3481_v40, %v3480_v34  ;;  %v3419_v43 = vpop.f32.mrb[38].mxu0  ;;  %v3483_v44 = vpop.f32.mrb[38].mxu1 }
 0x2d0   :  { %v3420_v45 = vpop.f32.mrb[39].mxu0  ;;  %v3484_v46 = vpop.f32.mrb[39].mxu1 }
 0x2d1   :  { %v2909_v47 = vadd.f32 %v3418_v41, %v4662_v39  ;;  %v3421_v48 = vadd.f32 %v3420_v45, %v3419_v43  ;;  %v3485_v49 = vadd.f32 %v3484_v46, %v3483_v44 }
 0x2d3   :  { %v3006_v50 = vadd.f32 %v3482_v42, %v2909_v47  ;;  %v2912_v51 = vadd.f32 %v3421_v48, %v4662_v39 }
 0x2d5   :  { %3062 = vst [vmem:[#allocation5 + $0x10] sm:$0xff] %v3006_v50  ;;  %v3009_v52 = vadd.f32 %v3485_v49, %v2912_v51  ;;  %v3422_v53 = vpop.f32.mrb[40].mxu0  ;;  %v3486_v54 = vpop.f32.mrb[40].mxu1 }
 0x2d6   :  { %v3423_v55 = vpop.f32.mrb[41].mxu0  ;;  %v3487_v56 = vpop.f32.mrb[41].mxu1 }
 0x2d7   :  { %3063 = vst [vmem:[#allocation5 + $0x18] sm:$0xff] %v3009_v52  ;;  %v3424_v57 = vadd.f32 %v3423_v55, %v3422_v53  ;;  %v3488_v58 = vadd.f32 %v3487_v56, %v3486_v54  ;;  %v3425_v59 = vpop.f32.mrb[42].mxu0  ;;  %v3489_v60 = vpop.f32.mrb[42].mxu1 }
 0x2d8   :  { %v3426_v61 = vpop.f32.mrb[43].mxu0  ;;  %v3490_v62 = vpop.f32.mrb[43].mxu1 }
 0x2d9   :  { %v2917_v63 = vadd.f32 %v3424_v57, %v4662_v39  ;;  %v3427_v0 = vadd.f32 %v3426_v61, %v3425_v59  ;;  %v3491_v1 = vadd.f32 %v3490_v62, %v3489_v60 }
 0x2db   :  { %v3014_v2 = vadd.f32 %v3488_v58, %v2917_v63  ;;  %v2920_v3 = vadd.f32 %v3427_v0, %v4662_v39 }
 0x2dd   :  { %3064 = vst [vmem:[#allocation5 + $0x20] sm:$0xff] %v3014_v2  ;;  %v3017_v4 = vadd.f32 %v3491_v1, %v2920_v3  ;;  %v3428_v5 = vpop.f32.mrb[44].mxu0  ;;  %v3492_v6 = vpop.f32.mrb[44].mxu1 }
 0x2de   :  { %v3429_v7 = vpop.f32.mrb[45].mxu0  ;;  %v3493_v8 = vpop.f32.mrb[45].mxu1 }
 0x2df   :  { %3065 = vst [vmem:[#allocation5 + $0x28] sm:$0xff] %v3017_v4  ;;  %v3430_v9 = vadd.f32 %v3429_v7, %v3428_v5  ;;  %v3494_v10 = vadd.f32 %v3493_v8, %v3492_v6  ;;  %v3431_v11 = vpop.f32.mrb[46].mxu0  ;;  %v3495_v12 = vpop.f32.mrb[46].mxu1 }
 0x2e0   :  { %v3432_v13 = vpop.f32.mrb[47].mxu0  ;;  %v3496_v14 = vpop.f32.mrb[47].mxu1 }
 0x2e1   :  { %v2925_v15 = vadd.f32 %v3430_v9, %v4662_v39  ;;  %v3433_v16 = vadd.f32 %v3432_v13, %v3431_v11  ;;  %v3497_v36 = vadd.f32 %v3496_v14, %v3495_v12 }
 0x2e3   :  { %v3022_v17 = vadd.f32 %v3494_v10, %v2925_v15  ;;  %v2928_v37 = vadd.f32 %v3433_v16, %v4662_v39 }
 0x2e5   :  { %3066 = vst [vmem:[#allocation5 + $0x30] sm:$0xff] %v3022_v17  ;;  %v3025_v18 = vadd.f32 %v3497_v36, %v2928_v37  ;;  %v3434_v38 = vpop.f32.mrb[48].mxu0  ;;  %v3498_v19 = vpop.f32.mrb[48].mxu1 }
 0x2e6   :  { %v3435_v20 = vpop.f32.mrb[49].mxu0  ;;  %v3499_v21 = vpop.f32.mrb[49].mxu1 }
 0x2e7   :  { %3067 = vst [vmem:[#allocation5 + $0x38] sm:$0xff] %v3025_v18  ;;  %v3436_v22 = vadd.f32 %v3435_v20, %v3434_v38  ;;  %v3500_v23 = vadd.f32 %v3499_v21, %v3498_v19  ;;  %v3437_v24 = vpop.f32.mrb[50].mxu0  ;;  %v3501_v25 = vpop.f32.mrb[50].mxu1 }
 0x2e8   :  { %v3438_v26 = vpop.f32.mrb[51].mxu0  ;;  %v3502_v27 = vpop.f32.mrb[51].mxu1 }
 0x2e9   :  { %v2933_v28 = vadd.f32 %v3436_v22, %v4662_v39  ;;  %v3439_v29 = vadd.f32 %v3438_v26, %v3437_v24  ;;  %v3503_v30 = vadd.f32 %v3502_v27, %v3501_v25 }
 0x2eb   :  { %v3030_v31 = vadd.f32 %v3500_v23, %v2933_v28  ;;  %v2936_v32 = vadd.f32 %v3439_v29, %v4662_v39 }
 0x2ed   :  { %3068 = vst [vmem:[#allocation5 + $0x40] sm:$0xff] %v3030_v31  ;;  %v3033_v33 = vadd.f32 %v3503_v30, %v2936_v32  ;;  %v3440_v34 = vpop.f32.mrb[52].mxu0  ;;  %v3504_v35 = vpop.f32.mrb[52].mxu1 }
 0x2ee   :  { %v3441_v40 = vpop.f32.mrb[53].mxu0  ;;  %v3505_v41 = vpop.f32.mrb[53].mxu1 }
 0x2ef   :  { %3069 = vst [vmem:[#allocation5 + $0x48] sm:$0xff] %v3033_v33  ;;  %v3442_v42 = vadd.f32 %v3441_v40, %v3440_v34  ;;  %v3506_v43 = vadd.f32 %v3505_v41, %v3504_v35  ;;  %v3443_v44 = vpop.f32.mrb[54].mxu0  ;;  %v3507_v45 = vpop.f32.mrb[54].mxu1 }
 0x2f0   :  { %v3444_v46 = vpop.f32.mrb[55].mxu0  ;;  %v3508_v47 = vpop.f32.mrb[55].mxu1 }
 0x2f1   :  { %v2941_v48 = vadd.f32 %v3442_v42, %v4662_v39  ;;  %v3445_v49 = vadd.f32 %v3444_v46, %v3443_v44  ;;  %v3509_v50 = vadd.f32 %v3508_v47, %v3507_v45 }
 0x2f3   :  { %v3038_v51 = vadd.f32 %v3506_v43, %v2941_v48  ;;  %v2944_v52 = vadd.f32 %v3445_v49, %v4662_v39 }
 0x2f5   :  { %3070 = vst [vmem:[#allocation5 + $0x50] sm:$0xff] %v3038_v51  ;;  %v3041_v53 = vadd.f32 %v3509_v50, %v2944_v52  ;;  %v3446_v54 = vpop.f32.mrb[56].mxu0  ;;  %v3510_v55 = vpop.f32.mrb[56].mxu1 }
 0x2f6   :  { %v3447_v56 = vpop.f32.mrb[57].mxu0  ;;  %v3511_v57 = vpop.f32.mrb[57].mxu1 }
 0x2f7   :  { %3071 = vst [vmem:[#allocation5 + $0x58] sm:$0xff] %v3041_v53  ;;  %v3448_v58 = vadd.f32 %v3447_v56, %v3446_v54  ;;  %v3512_v59 = vadd.f32 %v3511_v57, %v3510_v55  ;;  %v3449_v60 = vpop.f32.mrb[58].mxu0  ;;  %v3513_v61 = vpop.f32.mrb[58].mxu1 }
 0x2f8   :  { %v3450_v62 = vpop.f32.mrb[59].mxu0  ;;  %v3514_v63 = vpop.f32.mrb[59].mxu1 }
 0x2f9   :  { %v2949_v0 = vadd.f32 %v3448_v58, %v4662_v39  ;;  %v3451_v1 = vadd.f32 %v3450_v62, %v3449_v60  ;;  %v3515_v2 = vadd.f32 %v3514_v63, %v3513_v61 }
 0x2fb   :  { %v3046_v3 = vadd.f32 %v3512_v59, %v2949_v0  ;;  %v2952_v4 = vadd.f32 %v3451_v1, %v4662_v39 }
 0x2fd   :  { %3072 = vst [vmem:[#allocation5 + $0x60] sm:$0xff] %v3046_v3  ;;  %v3049_v5 = vadd.f32 %v3515_v2, %v2952_v4  ;;  %v3452_v6 = vpop.f32.mrb[60].mxu0  ;;  %v3516_v7 = vpop.f32.mrb[60].mxu1 }
 0x2fe   :  { %v3453_v8 = vpop.f32.mrb[61].mxu0  ;;  %v3517_v9 = vpop.f32.mrb[61].mxu1 }
 0x2ff   :  { %3073 = vst [vmem:[#allocation5 + $0x68] sm:$0xff] %v3049_v5  ;;  %v3454_v10 = vadd.f32 %v3453_v8, %v3452_v6  ;;  %v3518_v11 = vadd.f32 %v3517_v9, %v3516_v7  ;;  %v3455_v12 = vpop.f32.mrb[62].mxu0  ;;  %v3519_v13 = vpop.f32.mrb[62].mxu1 }
 0x300   :  { %v3456_v14 = vpop.f32.mrb[63].mxu0  ;;  %v3520_v15 = vpop.f32.mrb[63].mxu1 }
 0x301   :  { %v2957_v16 = vadd.f32 %v3454_v10, %v4662_v39  ;;  %v3457_v36 = vadd.f32 %v3456_v14, %v3455_v12  ;;  %v3521_v17 = vadd.f32 %v3520_v15, %v3519_v13 }
 0x303   :  { %v3054_v37 = vadd.f32 %v3518_v11, %v2957_v16  ;;  %v2960_v18 = vadd.f32 %v3457_v36, %v4662_v39 }
 0x305   :  { %3074 = vst [vmem:[#allocation5 + $0x70] sm:$0xff] %v3054_v37  ;;  %v3057_v38 = vadd.f32 %v3521_v17, %v2960_v18 }
 0x307   :  { %3075 = vst [vmem:[#allocation5 + $0x78] sm:$0xff] %v3057_v38 }
 0x308   :  { %4224 = shalt.err (!%p4221_p12)
}
 0x309   :  { %s4225_s6 = scalar_lea.hbm %s4697_s5, 2048 }
 0x30a   :  { %p4226_p13 = scmp.ne.s32.totalorder %s4697_s5, %s4225_s6  ;;  %p4229_p0 = scmp.lt.u32.totalorder %s4225_s6, %s4697_s5 }
 0x30c   :  { %p4231_p1 = pnand %p4229_p0, %p4226_p13 }
 0x30e   :  { %4234 = shalt.err (!%p4231_p1)
}
 0x30f   :  { %s4244_s10 = smov 128   ;;  %s4245_s11 = smov 8  }
 0x310   :  { %3087 = dma.vmem_to_hbm [thread:$0]  %s3082_s27, 2048, %s4697_s5, [#allocation4], %s4244_s10, %s4244_s10, %s4245_s11  }
 0x311   :  { %4237 = dma.done.wait [#allocation4], 2048  }
 0x312   :  { %4238 = vsyncadd [#allocation4], 4294965248 }
 0x313   :  { %3091 = vsyncpa [#allocation3], 1 }
 0x314   :  { %3092 = vsyncpa [#allocation4], 1 }

</bundles_post_ra>
